<compile_context>
chip_gen: v6e
topology: v6e:2x2x1
jax: 0.10.0
libtpu: 0.0.40
codegen_flags: <defaults>
</compile_context>

<pallas_src>
import functools
import math

import jax
import jax.numpy as jnp
from jax import lax
from jax.experimental import pallas as pl
from jax.experimental.pallas import tpu as pltpu

_EPS_NORM = 1e-8     # ||v|| guard in the Poincare normalization
_EPS_ACOSH = 1e-12   # under the sqrt in arccosh
_EPS_DENOM = 1e-12   # (1 - |z|^2) guard (robustness near the ball boundary)


def _poincare_normalize(v):
    # Map R^D into the open unit ball: z = (v / ||v||) * tanh(||v||).
    n = jnp.sqrt(jnp.sum(v * v, axis=-1, keepdims=True))
    return v * (jnp.tanh(n) / (n + _EPS_NORM))


def _round_up(x, m):
    return (x + m - 1) // m * m


def _pair_loss_kernel(di_ref, djT_ref, zi_ref, zjT_ref, scale_ref,
                      out_ref, match_acc_ref, *, s_len, n_valid):
    """Accumulates lane-dense partial row-sums of the per-pair squared error.

    di:  (tm, tk)  one-hot panel (k-chunk of the S*A axis), int8 or bf16.
    djT: (tk, tn)  transposed one-hot panel.
    zi:  (tm, Dp)  Poincare-normalized embeddings (D zero-padded to 128).
    zjT: (Dp, tn)  transposed embeddings.
    scale: (1,) f32 SMEM, exp(log_scale).
    out: (tm, 128) f32, partial row sums of err^2 over cols >= row, col < N.
    match_acc: (tm, tn) int32/f32 VMEM scratch, match-count accumulator.
    """
    i = pl.program_id(0)
    j = pl.program_id(1)
    k = pl.program_id(2)
    nk = pl.num_programs(2)

    tm, tn = match_acc_ref.shape

    # Symmetry: only block tiles intersecting the upper triangle (col >= row).
    compute_block = (j + 1) * tn > i * tm

    @pl.when(jnp.logical_and(j == 0, k == 0))
    def _init_out():
        out_ref[...] = jnp.zeros_like(out_ref)

    @pl.when(jnp.logical_and(compute_block, k == 0))
    def _init_acc():
        match_acc_ref[...] = jnp.zeros_like(match_acc_ref)

    @pl.when(compute_block)
    def _accumulate_matches():
        # One-hot inner product == #matching positions -> MXU GEMM.
        match_acc_ref[...] += lax.dot_general(
            di_ref[...], djT_ref[...],
            dimension_numbers=(((1,), (0,)), ((), ())),
            preferred_element_type=match_acc_ref.dtype)

    @pl.when(jnp.logical_and(compute_block, k == nk - 1))
    def _finalize():
        ham = (s_len - match_acc_ref[...].astype(jnp.float32)) * (1.0 / s_len)

        zi = zi_ref[...]                                     # (tm, Dp)
        zjT = zjT_ref[...]                                   # (Dp, tn)
        zsq_i = jnp.sum(zi * zi, axis=1, keepdims=True)      # (tm, 1)
        zsq_j = jnp.sum(zjT * zjT, axis=0, keepdims=True)    # (1, tn)
        cross = jnp.dot(zi, zjT, preferred_element_type=jnp.float32)  # (tm, tn)

        diff_sq = jnp.maximum(zsq_i + zsq_j - 2.0 * cross, 0.0)
        inv_i = pl.reciprocal(jnp.maximum(1.0 - zsq_i, _EPS_DENOM), approx=True)
        inv_j = pl.reciprocal(jnp.maximum(1.0 - zsq_j, _EPS_DENOM), approx=True)
        x = 1.0 + 2.0 * diff_sq * (inv_i * inv_j)
        # arccosh(x) = log(x + sqrt(x^2 - 1))
        dist = jnp.log(x + jnp.sqrt(x * x - 1.0 + _EPS_ACOSH)) * scale_ref[0]

        err = ham - dist
        err2 = err * err

        # Keep only the upper triangle (col >= row) and valid (unpadded) cols.
        rows = i * tm + lax.broadcasted_iota(jnp.int32, (tm, tn), 0)
        cols = j * tn + lax.broadcasted_iota(jnp.int32, (tm, tn), 1)
        keep = jnp.logical_and(cols >= rows, cols < n_valid)
        err2 = jnp.where(keep, err2, 0.0)

        # Lane-dense partial row sums: fold tn lanes down to 128.
        row_part = err2[:, 0:128]
        for c in range(1, tn // 128):
            row_part = row_part + err2[:, c * 128:(c + 1) * 128]
        out_ref[...] += row_part


def _tpu_kind():
    try:
        return jax.devices()[0].device_kind.lower()
    except Exception:
        return ""


def sequence_distance_embedding_loss(data_NxSxA, embedding_table_NxD, log_scale,
                                     *, tile_n=None, tile_k=None):
    """Forward pass of SequenceDistanceEmbeddingInitializer: returns MSE loss."""
    N, S, A = data_NxSxA.shape
    D = embedding_table_NxD.shape[-1]
    SA = S * A

    # ---- generation-aware panel dtype / tiling / VMEM budget ----
    kind = _tpu_kind()
    if "v7" in kind:
        # v7x: 64 MiB VMEM/TC, no int MXU path -> bf16 panels, conservative tiles.
        panel_dtype, acc_dtype = jnp.bfloat16, jnp.float32
        dft_n, dft_k, vmem_limit = 512, 512, 48 << 20
    elif "v6" in kind:
        # v6e: int8-native MXU, 128 MiB VMEM -> widest tiles.
        panel_dtype, acc_dtype = jnp.int8, jnp.int32
        dft_n, dft_k, vmem_limit = 1024, 512, 100 << 20
    elif "v5" in kind:
        panel_dtype, acc_dtype = jnp.int8, jnp.int32
        dft_n, dft_k, vmem_limit = 512, 1024, 64 << 20
    else:
        panel_dtype, acc_dtype = jnp.bfloat16, jnp.float32
        dft_n, dft_k, vmem_limit = 512, 512, 32 << 20
    tile_n = dft_n if tile_n is None else tile_n
    tile_k = dft_k if tile_k is None else tile_k

    # ---- one-time prep in the wrapper (hoisted out of the kernel) ----
    z = _poincare_normalize(embedding_table_NxD.astype(jnp.float32))   # (N, D)
    scale = jnp.exp(jnp.asarray(log_scale, jnp.float32)).reshape(1)
    data2d = data_NxSxA.reshape(N, SA)                                  # (N, S*A)

    # ---- padding (zero padding is exact for match counts) ----
    if N <= tile_n:
        n_pad = _round_up(N, 128)
        tm = tn = n_pad
    else:
        n_pad = _round_up(N, tile_n)
        tm = tn = tile_n
    if SA <= tile_k:
        sa_pad = _round_up(SA, 256)
        tk = sa_pad
    else:
        sa_pad = _round_up(SA, tile_k)
        tk = tile_k
    d_pad = _round_up(D, 128)

    z_i = jnp.pad(z, ((0, n_pad - N), (0, d_pad - D)))                  # (Np, Dp)
    z_jT = z_i.T                                                        # (Dp, Np)

    grid = (n_pad // tm, n_pad // tn, sa_pad // tk)
    kernel = functools.partial(_pair_loss_kernel, s_len=float(S), n_valid=N)

    def _run(p_dtype, a_dtype):
        # One-hot {0,1} is exact in int8 / bf16 -> lossless narrow panels.
        data_i = jnp.pad(data2d.astype(p_dtype),
                         ((0, n_pad - N), (0, sa_pad - SA)))            # (Np, SAp)
        data_jT = data_i.T                                              # (SAp, Np)
        return pl.pallas_call(
            kernel,
            grid=grid,
            in_specs=[
                pl.BlockSpec((tm, tk), lambda i, j, k: (i, k)),      # data i-panel
                pl.BlockSpec((tk, tn), lambda i, j, k: (k, j)),      # data^T j-panel
                pl.BlockSpec((tm, d_pad), lambda i, j, k: (i, 0)),   # z, i rows
                pl.BlockSpec((d_pad, tn), lambda i, j, k: (0, j)),   # z^T, j cols
                pl.BlockSpec(memory_space=pltpu.MemorySpace.SMEM),   # exp(log_scale)
            ],
            out_specs=pl.BlockSpec((tm, 128), lambda i, j, k: (i, 0)),
            out_shape=jax.ShapeDtypeStruct((n_pad, 128), jnp.float32),
            scratch_shapes=[pltpu.VMEM((tm, tn), a_dtype)],          # match counts
            compiler_params=pltpu.CompilerParams(
                dimension_semantics=("parallel", "arbitrary", "arbitrary"),
                vmem_limit_bytes=vmem_limit),
        )(data_i, data_jT, z_i, z_jT, scale)

    try:
        row_sums = _run(panel_dtype, acc_dtype)
    except Exception:
        if panel_dtype == jnp.bfloat16:
            raise
        # Fallback if the int8 dot does not lower on this chip: bf16 panels.
        row_sums = _run(jnp.bfloat16, jnp.float32)

    # row_sums[r, :].sum() == sum_{c >= r, c < N} err^2  for each valid row r.
    upper_sum = jnp.sum(row_sums[:N, :])
    # Diagonal terms: ham = 0, diff_sq = 0 -> dist = log(1 + sqrt(eps)) * scale.
    diag_dist = math.log1p(math.sqrt(_EPS_ACOSH)) * scale[0]
    diag_sum = N * diag_dist * diag_dist
    # full sum over N x N = 2 * (strict upper + diag) - diag.
    return (2.0 * upper_sum - diag_sum) / (N * N)


def _reference_loss(data_NxSxA, embedding_table_NxD, log_scale):
    """Pure-JAX reference of the same forward pass (for verification)."""
    N, S, A = data_NxSxA.shape
    eq = data_NxSxA[:, None, :, :] == data_NxSxA[None, :, :, :]
    match = jnp.all(eq, axis=-1)
    ham = (S - jnp.sum(match.astype(jnp.float32), axis=-1)) / S

    z = _poincare_normalize(embedding_table_NxD.astype(jnp.float32))
    z_sq = jnp.sum(z * z, axis=-1)
    diff_sq = jnp.sum((z[:, None, :] - z[None, :, :]) ** 2, axis=-1)
    denom = jnp.maximum((1.0 - z_sq[:, None]) * (1.0 - z_sq[None, :]), _EPS_DENOM)
    x = 1.0 + 2.0 * diff_sq / denom
    dist = jnp.log(x + jnp.sqrt(x * x - 1.0 + _EPS_ACOSH)) * jnp.exp(log_scale)
    return jnp.mean((ham - dist) ** 2)


def _close(a, b, rtol=1e-3, atol=2e-4):
    a, b = float(a), float(b)
    return abs(a - b) <= atol + rtol * abs(b)


if __name__ == "__main__":
    key = jax.random.PRNGKey(0)

    # Case 1: small shapes matching the module (N seqs, length S, alphabet A, dim D).
    N, S, A, D = 8, 16, 4, 2
    k_tok, k_emb, key = jax.random.split(key, 3)
    tokens_NxS = jax.random.randint(k_tok, (N, S), 0, A)
    data_NxSxA = jax.nn.one_hot(tokens_NxS, A, dtype=jnp.float32)
    embedding_table_NxD = 0.1 * jax.random.normal(k_emb, (N, D), dtype=jnp.float32)
    log_scale = jnp.float32(math.log(0.1))

    loss = jax.block_until_ready(
        sequence_distance_embedding_loss(data_NxSxA, embedding_table_NxD, log_scale))
    ref = jax.block_until_ready(
        _reference_loss(data_NxSxA, embedding_table_NxD, log_scale))
    assert _close(loss, ref), (float(loss), float(ref))

    # Case 2: non-multiple-of-128 N, odd S*A to exercise the padding/mask path.
    N2, S2, A2, D2 = 13, 10, 5, 3
    k_tok2, k_emb2, key = jax.random.split(key, 3)
    tokens2 = jax.random.randint(k_tok2, (N2, S2), 0, A2)
    data2 = jax.nn.one_hot(tokens2, A2, dtype=jnp.float32)
    emb2 = 0.1 * jax.random.normal(k_emb2, (N2, D2), dtype=jnp.float32)

    loss2 = jax.block_until_ready(
        sequence_distance_embedding_loss(data2, emb2, log_scale))
    ref2 = jax.block_until_ready(_reference_loss(data2, emb2, log_scale))
    assert _close(loss2, ref2), (float(loss2), float(ref2))

    print("KERNEL_OK")
</pallas_src>

<mosaic_0001>
module attributes {stable_mosaic.version = 11 : i64} {
  func.func @_pair_loss_kernel(%arg0: i32, %arg1: i32, %arg2: i32, %arg3: memref<128x256xbf16, #tpu.memory_space<vmem>>, %arg4: memref<256x128xbf16, #tpu.memory_space<vmem>>, %arg5: memref<128x128xf32, #tpu.memory_space<vmem>>, %arg6: memref<128x128xf32, #tpu.memory_space<vmem>>, %arg7: memref<1xf32, #tpu.memory_space<smem>>, %arg8: memref<128x128xf32, #tpu.memory_space<vmem>>, %arg9: memref<128x128xf32, #tpu.memory_space<vmem>>) attributes {dimension_semantics = [#tpu.dimension_semantics<parallel>, #tpu.dimension_semantics<arbitrary>, #tpu.dimension_semantics<arbitrary>], iteration_bounds = array<i64: 1, 1, 1>, scalar_prefetch = 0 : i64, scratch_operands = 1 : i64, tpu.core_type = #tpu.core_type<tc>, window_params = [{transform_indices = @transform_0, window_bounds = array<i64: 128, 256>}, {transform_indices = @transform_1, window_bounds = array<i64: 256, 128>}, {transform_indices = @transform_2, window_bounds = array<i64: 128, 128>}, {transform_indices = @transform_3, window_bounds = array<i64: 128, 128>}, {transform_indices = @transform_4, window_bounds = array<i64: 1>}, {transform_indices = @transform_5, window_bounds = array<i64: 128, 128>}]} {
    %c1_i32 = arith.constant 1 : i32
    %0 = arith.addi %arg1, %c1_i32 : i32
    %c128_i32 = arith.constant 128 : i32
    %1 = arith.muli %0, %c128_i32 : i32
    %c128_i32_0 = arith.constant 128 : i32
    %2 = arith.muli %arg0, %c128_i32_0 : i32
    %3 = arith.cmpi sgt, %1, %2 : i32
    %c0_i32 = arith.constant 0 : i32
    %4 = arith.cmpi eq, %arg1, %c0_i32 : i32
    %c0_i32_1 = arith.constant 0 : i32
    %5 = arith.cmpi eq, %arg2, %c0_i32_1 : i32
    %6 = arith.andi %4, %5 : i1
    %7 = arith.extui %6 : i1 to i32
    %c0_i32_2 = arith.constant 0 : i32
    %8 = arith.cmpi ne, %7, %c0_i32_2 : i32
    scf.if %8 {
      %cst = arith.constant 0.000000e+00 : f32
      %19 = vector.broadcast %cst : f32 to vector<128x128xf32>
      %c0 = arith.constant 0 : index
      %c0_8 = arith.constant 0 : index
      %20 = vector.load %arg8[%c0, %c0_8] : memref<128x128xf32, #tpu.memory_space<vmem>>, vector<128x128xf32>
      tpu.vector_store %arg8[%c0, %c0_8], %19 {strides = array<i32>} : memref<128x128xf32, #tpu.memory_space<vmem>>, vector<128x128xf32>,
    } else {
    }
    %c0_i32_3 = arith.constant 0 : i32
    %9 = arith.cmpi eq, %arg2, %c0_i32_3 : i32
    %10 = arith.andi %3, %9 : i1
    %11 = arith.extui %10 : i1 to i32
    %c0_i32_4 = arith.constant 0 : i32
    %12 = arith.cmpi ne, %11, %c0_i32_4 : i32
    scf.if %12 {
      %cst = arith.constant 0.000000e+00 : f32
      %19 = vector.broadcast %cst : f32 to vector<128x128xf32>
      %c0 = arith.constant 0 : index
      %c0_8 = arith.constant 0 : index
      %20 = vector.load %arg9[%c0, %c0_8] : memref<128x128xf32, #tpu.memory_space<vmem>>, vector<128x128xf32>
      tpu.vector_store %arg9[%c0, %c0_8], %19 {strides = array<i32>} : memref<128x128xf32, #tpu.memory_space<vmem>>, vector<128x128xf32>,
    } else {
    }
    %13 = arith.extui %3 : i1 to i32
    %c0_i32_5 = arith.constant 0 : i32
    %14 = arith.cmpi ne, %13, %c0_i32_5 : i32
    scf.if %14 {
      %c0 = arith.constant 0 : index
      %c0_8 = arith.constant 0 : index
      %19 = vector.load %arg9[%c0, %c0_8] : memref<128x128xf32, #tpu.memory_space<vmem>>, vector<128x128xf32>
      %c0_9 = arith.constant 0 : index
      %c0_10 = arith.constant 0 : index
      %20 = vector.load %arg3[%c0_9, %c0_10] : memref<128x256xbf16, #tpu.memory_space<vmem>>, vector<128x256xbf16>
      %c0_11 = arith.constant 0 : index
      %c0_12 = arith.constant 0 : index
      %21 = vector.load %arg4[%c0_11, %c0_12] : memref<256x128xbf16, #tpu.memory_space<vmem>>, vector<256x128xbf16>
      %cst = arith.constant dense<0.000000e+00> : vector<128x128xf32>
      %22 = tpu.matmul %20, %21, %cst {dimension_numbers = #tpu.dot_dimension_numbers<[1], [0], [0], [1], [0, 0, 1, 1], [], []>} : vector<128x256xbf16>, vector<256x128xbf16>, vector<128x128xf32> -> vector<128x128xf32>
      %23 = arith.addf %19, %22 : vector<128x128xf32>
      %c0_13 = arith.constant 0 : index
      %c0_14 = arith.constant 0 : index
      %24 = vector.load %arg9[%c0_13, %c0_14] : memref<128x128xf32, #tpu.memory_space<vmem>>, vector<128x128xf32>
      tpu.vector_store %arg9[%c0_13, %c0_14], %23 {strides = array<i32>} : memref<128x128xf32, #tpu.memory_space<vmem>>, vector<128x128xf32>,
    } else {
    }
    %c0_i32_6 = arith.constant 0 : i32
    %15 = arith.cmpi eq, %arg2, %c0_i32_6 : i32
    %16 = arith.andi %3, %15 : i1
    %17 = arith.extui %16 : i1 to i32
    %c0_i32_7 = arith.constant 0 : i32
    %18 = arith.cmpi ne, %17, %c0_i32_7 : i32
    scf.if %18 {
      %c0 = arith.constant 0 : index
      %c0_8 = arith.constant 0 : index
      %19 = vector.load %arg9[%c0, %c0_8] : memref<128x128xf32, #tpu.memory_space<vmem>>, vector<128x128xf32>
      %cst = arith.constant 1.600000e+01 : f32
      %20 = vector.broadcast %cst : f32 to vector<128x128xf32>
      %21 = arith.subf %20, %19 : vector<128x128xf32>
      %cst_9 = arith.constant 6.250000e-02 : f32
      %22 = vector.broadcast %cst_9 : f32 to vector<128x128xf32>
      %23 = arith.mulf %21, %22 : vector<128x128xf32>
      %c0_10 = arith.constant 0 : index
      %c0_11 = arith.constant 0 : index
      %24 = vector.load %arg5[%c0_10, %c0_11] : memref<128x128xf32, #tpu.memory_space<vmem>>, vector<128x128xf32>
      %c0_12 = arith.constant 0 : index
      %c0_13 = arith.constant 0 : index
      %25 = vector.load %arg6[%c0_12, %c0_13] : memref<128x128xf32, #tpu.memory_space<vmem>>, vector<128x128xf32>
      %26 = arith.mulf %24, %24 : vector<128x128xf32>
      %cst_14 = arith.constant dense<0.000000e+00> : vector<128xf32>
      %27 = vector.multi_reduction <add>, %26, %cst_14 [1] : vector<128x128xf32> to vector<128xf32>
      %28 = vector.shape_cast %27 : vector<128xf32> to vector<128x1xf32>
      %29 = arith.mulf %25, %25 : vector<128x128xf32>
      %cst_15 = arith.constant dense<0.000000e+00> : vector<128xf32>
      %30 = vector.multi_reduction <add>, %29, %cst_15 [0] : vector<128x128xf32> to vector<128xf32>
      %31 = vector.shape_cast %30 : vector<128xf32> to vector<1x128xf32>
      %cst_16 = arith.constant dense<0.000000e+00> : vector<128x128xf32>
      %32 = tpu.matmul %24, %25, %cst_16 {dimension_numbers = #tpu.dot_dimension_numbers<[1], [0], [0], [1], [0, 0, 1, 1], [], []>} : vector<128x128xf32>, vector<128x128xf32>, vector<128x128xf32> -> vector<128x128xf32>
      %33 = vector.broadcast %28 : vector<128x1xf32> to vector<128x128xf32>
      %34 = vector.broadcast %31 : vector<1x128xf32> to vector<128x128xf32>
      %35 = arith.addf %33, %34 : vector<128x128xf32>
      %cst_17 = arith.constant 2.000000e+00 : f32
      %36 = vector.broadcast %cst_17 : f32 to vector<128x128xf32>
      %37 = arith.mulf %36, %32 : vector<128x128xf32>
      %38 = arith.subf %35, %37 : vector<128x128xf32>
      %cst_18 = arith.constant 0.000000e+00 : f32
      %39 = vector.broadcast %cst_18 : f32 to vector<128x128xf32>
      %40 = arith.maximumf %38, %39 : vector<128x128xf32>
      %cst_19 = arith.constant 1.000000e+00 : f32
      %41 = vector.broadcast %cst_19 : f32 to vector<128x1xf32>
      %42 = arith.subf %41, %28 : vector<128x1xf32>
      %cst_20 = arith.constant 9.99999996E-13 : f32
      %43 = vector.broadcast %cst_20 : f32 to vector<128x1xf32>
      %44 = arith.maximumf %42, %43 : vector<128x1xf32>
      %45 = tpu.reciprocal %44 {approx = true} : vector<128x1xf32> -> vector<128x1xf32>
      %cst_21 = arith.constant 1.000000e+00 : f32
      %46 = vector.broadcast %cst_21 : f32 to vector<1x128xf32>
      %47 = arith.subf %46, %31 : vector<1x128xf32>
      %cst_22 = arith.constant 9.99999996E-13 : f32
      %48 = vector.broadcast %cst_22 : f32 to vector<1x128xf32>
      %49 = arith.maximumf %47, %48 : vector<1x128xf32>
      %50 = tpu.reciprocal %49 {approx = true} : vector<1x128xf32> -> vector<1x128xf32>
      %cst_23 = arith.constant 2.000000e+00 : f32
      %51 = vector.broadcast %cst_23 : f32 to vector<128x128xf32>
      %52 = arith.mulf %51, %40 : vector<128x128xf32>
      %53 = vector.broadcast %45 : vector<128x1xf32> to vector<128x128xf32>
      %54 = vector.broadcast %50 : vector<1x128xf32> to vector<128x128xf32>
      %55 = arith.mulf %53, %54 : vector<128x128xf32>
      %56 = arith.mulf %52, %55 : vector<128x128xf32>
      %cst_24 = arith.constant 1.000000e+00 : f32
      %57 = vector.broadcast %cst_24 : f32 to vector<128x128xf32>
      %58 = arith.addf %57, %56 : vector<128x128xf32>
      %59 = arith.mulf %58, %58 : vector<128x128xf32>
      %cst_25 = arith.constant 1.000000e+00 : f32
      %60 = vector.broadcast %cst_25 : f32 to vector<128x128xf32>
      %61 = arith.subf %59, %60 : vector<128x128xf32>
      %cst_26 = arith.constant 9.99999996E-13 : f32
      %62 = vector.broadcast %cst_26 : f32 to vector<128x128xf32>
      %63 = arith.addf %61, %62 : vector<128x128xf32>
      %64 = math.sqrt %63 : vector<128x128xf32>
      %65 = arith.addf %58, %64 : vector<128x128xf32>
      %66 = math.log %65 : vector<128x128xf32>
      %c0_27 = arith.constant 0 : index
      %67 = memref.load %arg7[%c0_27] : memref<1xf32, #tpu.memory_space<smem>>
      %68 = vector.broadcast %67 : f32 to vector<128x128xf32>
      %69 = arith.mulf %66, %68 : vector<128x128xf32>
      %70 = arith.subf %23, %69 : vector<128x128xf32>
      %71 = arith.mulf %70, %70 : vector<128x128xf32>
      %c128_i32_28 = arith.constant 128 : i32
      %72 = arith.muli %arg0, %c128_i32_28 : i32
      %73 = tpu.iota {dimensions = array<i32: 0>} : vector<128x128xi32>
      %74 = vector.broadcast %72 : i32 to vector<128x128xi32>
      %75 = arith.addi %74, %73 : vector<128x128xi32>
      %c128_i32_29 = arith.constant 128 : i32
      %76 = arith.muli %arg1, %c128_i32_29 : i32
      %77 = tpu.iota {dimensions = array<i32: 1>} : vector<128x128xi32>
      %78 = vector.broadcast %76 : i32 to vector<128x128xi32>
      %79 = arith.addi %78, %77 : vector<128x128xi32>
      %80 = arith.cmpi sge, %79, %75 : vector<128x128xi32>
      %c8_i32 = arith.constant 8 : i32
      %81 = vector.broadcast %c8_i32 : i32 to vector<128x128xi32>
      %82 = arith.cmpi slt, %79, %81 : vector<128x128xi32>
      %83 = arith.andi %80, %82 : vector<128x128xi1>
      %cst_30 = arith.constant 0.000000e+00 : f32
      %84 = vector.broadcast %cst_30 : f32 to vector<128x128xf32>
      %85 = arith.select %83, %71, %84 : vector<128x128xi1>, vector<128x128xf32>
      %c0_31 = arith.constant 0 : index
      %c0_32 = arith.constant 0 : index
      %86 = vector.load %arg8[%c0_31, %c0_32] : memref<128x128xf32, #tpu.memory_space<vmem>>, vector<128x128xf32>
      %87 = arith.addf %86, %85 : vector<128x128xf32>
      %c0_33 = arith.constant 0 : index
      %c0_34 = arith.constant 0 : index
      %88 = vector.load %arg8[%c0_33, %c0_34] : memref<128x128xf32, #tpu.memory_space<vmem>>, vector<128x128xf32>
      tpu.vector_store %arg8[%c0_33, %c0_34], %87 {strides = array<i32>} : memref<128x128xf32, #tpu.memory_space<vmem>>, vector<128x128xf32>,
    } else {
    }
    return
  }
  func.func @transform_0(%arg0: i32, %arg1: i32, %arg2: i32) -> (i32, i32) {
    %c0_i32 = arith.constant 0 : i32
    return %arg0, %arg2 : i32, i32
  }
  func.func @transform_1(%arg0: i32, %arg1: i32, %arg2: i32) -> (i32, i32) {
    %c0_i32 = arith.constant 0 : i32
    return %arg2, %arg1 : i32, i32
  }
  func.func @transform_2(%arg0: i32, %arg1: i32, %arg2: i32) -> (i32, i32) {
    %c0_i32 = arith.constant 0 : i32
    %c0_i32_0 = arith.constant 0 : i32
    return %arg0, %c0_i32 : i32, i32
  }
  func.func @transform_3(%arg0: i32, %arg1: i32, %arg2: i32) -> (i32, i32) {
    %c0_i32 = arith.constant 0 : i32
    %c0_i32_0 = arith.constant 0 : i32
    return %c0_i32, %arg1 : i32, i32
  }
  func.func @transform_4(%arg0: i32, %arg1: i32, %arg2: i32) -> i32 {
    %c0_i32 = arith.constant 0 : i32
    %c0_i32_0 = arith.constant 0 : i32
    return %c0_i32 : i32
  }
  func.func @transform_5(%arg0: i32, %arg1: i32, %arg2: i32) -> (i32, i32) {
    %c0_i32 = arith.constant 0 : i32
    %c0_i32_0 = arith.constant 0 : i32
    return %arg0, %c0_i32 : i32, i32
  }
}

</mosaic_0001>

<bundles_post_ra>
// kernel: tpu_custom_call.1
= control target key start
LH: loop header
LB: loop body
LE: loop exit
PB: predicated region body
PF: predicated region fallthrough
CT: control target
= control target key end

     0   :  { %11 = vsyncpa [#allocation5], 0  ;;  %s2742_s0 = inlined_call_operand.hbm [shape: bf16[128,256], index: 0, kind: input, shape index: {}]   ;;  %s2743_s1 = inlined_call_operand.hbm [shape: bf16[256,128], index: 1, kind: input, shape index: {}]   ;;  %s2744_s2 = inlined_call_operand.hbm [shape: f32[128,128], index: 2, kind: input, shape index: {}]   ;;  %s2745_s3 = inlined_call_operand.hbm [shape: f32[128,128], index: 3, kind: input, shape index: {}]   ;;  %s2746_s4 = inlined_call_operand.<no memory space> [shape: f32[1], index: 4, kind: input, shape index: {}]   ;;  %s2747_s5 = inlined_call_operand.hbm [shape: f32[128,128], index: 5, kind: output, shape index: {}]  }
   0x1   :  { %12 = vsyncpa [#allocation8], 0 }
   0x2   :  { %13 = vsyncpa [#allocation11], 0 }
   0x3   :  { %14 = vsyncpa [#allocation6], 0  ;;  %s1856_s18 = smov [#allocation7]  }
   0x4   :  { %s32_s19 = sshll.u32 %s1856_s18, 4  ;;  %s33_s19 = int_to_ptr.vmem [resolvable:$true] %s32_s19 }
   0x5   :  { %s1756_s20 = scalar_lea.vmem %s33_s19, 2048  ;;  %p1761_p1 = scmp.lt.s32.totalorder %s33_s19, %s33_s19 }
   0x6   :  { %p1757_p0 = scmp.ne.s32.totalorder %s33_s19, %s1756_s20  ;;  %p1762_p2 = scmp.lt.s32.totalorder %s1756_s20, %s1756_s20 }
   0x8   :  { %p1763_p3 = por %p1762_p2, %p1761_p1 }
   0xa   :  { %p1764_p4 = pnand %p1763_p3, %p1757_p0 }
   0xc   :  { %1767 = shalt.err (!%p1764_p4)
}
   0xd   :  { %s1857_s21 = smov 64   ;;  %s1858_s22 = smov 4  }
   0xe   :  { %38 = dma.hbm_to_vmem [thread:$0]  %s2743_s1, 2048, %s33_s19, [#allocation8], %s1857_s21, %s1857_s21, %s1858_s22  }
   0xf   :  { %s1859_s25 = smov [#allocation4]  }
  0x10   :  { %s20_s26 = sshll.u32 %s1859_s25, 4  ;;  %s21_s26 = int_to_ptr.vmem [resolvable:$true] %s20_s26 }
  0x11   :  { %s1776_s27 = scalar_lea.vmem %s21_s26, 2048  ;;  %p1781_p6 = scmp.lt.s32.totalorder %s21_s26, %s21_s26 }
  0x12   :  { %p1777_p5 = scmp.ne.s32.totalorder %s21_s26, %s1776_s27  ;;  %p1782_p7 = scmp.lt.s32.totalorder %s1776_s27, %s1776_s27 }
  0x14   :  { %p1783_p8 = por %p1782_p7, %p1781_p6 }
  0x16   :  { %p1784_p9 = pnand %p1783_p8, %p1777_p5 }
  0x18   :  { %1787 = shalt.err (!%p1784_p9)
}
  0x19   :  { %s1860_s28 = smov 128   ;;  %s1861_s29 = smov 8  }
  0x1a   :  { %26 = dma.hbm_to_vmem [thread:$0]  %s2742_s0, 2048, %s21_s26, [#allocation5], %s1860_s28, %s1860_s28, %s1861_s29  }
  0x1b   :  { %s1862_s1 = smov [#allocation9]   ;;  %s1863_s8 = smov [#allocation10]  }
  0x1c   :  { %s44_s7 = sshll.u32 %s1862_s1, 4  ;;  %s56_s9 = sshll.u32 %s1863_s8, 4  ;;  %s45_s7 = int_to_ptr.vmem [resolvable:$true] %s44_s7  ;;  %s57_s9 = int_to_ptr.vmem [resolvable:$true] %s56_s9 }
  0x1d   :  { %s1796_s10 = scalar_lea.vmem %s45_s7, 2048  ;;  %p1801_p11 = scmp.lt.s32.totalorder %s45_s7, %s45_s7 }
  0x1e   :  { %p1797_p10 = scmp.ne.s32.totalorder %s45_s7, %s1796_s10  ;;  %p1802_p12 = scmp.lt.s32.totalorder %s1796_s10, %s1796_s10 }
  0x20   :  { %p1803_p13 = por %p1802_p12, %p1801_p11 }
  0x22   :  { %p1804_p0 = pnand %p1803_p13, %p1797_p10 }
  0x24   :  { %1807 = shalt.err (!%p1804_p0)
}
  0x25   :  { %50 = dma.hbm_to_vmem [thread:$0]  %s2744_s2, 2048, %s45_s7, [#allocation8], %s1860_s28, %s1860_s28, %s1861_s29  }
  0x26   :  { %s1816_s0 = scalar_lea.vmem %s57_s9, 2048  ;;  %p1821_p2 = scmp.lt.s32.totalorder %s57_s9, %s57_s9 }
  0x27   :  { %p1817_p1 = scmp.ne.s32.totalorder %s57_s9, %s1816_s0  ;;  %p1822_p3 = scmp.lt.s32.totalorder %s1816_s0, %s1816_s0 }
  0x29   :  { %p1823_p4 = por %p1822_p3, %p1821_p2 }
  0x2b   :  { %p1824_p5 = pnand %p1823_p4, %p1817_p1 }
  0x2d   :  { %1827 = shalt.err (!%p1824_p5)
}
  0x2e   :  { %62 = dma.hbm_to_vmem [thread:$0]  %s2745_s3, 2048, %s57_s9, [#allocation11], %s1860_s28, %s1860_s28, %s1861_s29  }
  0x2f   :  { %1848 = dma.done.wait [#allocation5], 2048  }
  0x30   :  { %1849 = vsyncadd [#allocation5], 4294965248 }
  0x31   :  { %1850 = dma.done.wait [#allocation8], 4096  }
  0x32   :  { %1851 = vsyncadd [#allocation8], 4294963200 }
  0x33   :  { %1852 = dma.done.wait [#allocation11], 2048  }
  0x34   :  { %1853 = vsyncadd [#allocation11], 4294965248  ;;  %v1916_v0 = vld [vmem:[#allocation10 + $0x78] sm:$0xff]  ;;  %v1918_v1 = vld [vmem:[#allocation10 + $0x70] sm:$0xff] }
  0x35   :  { %1544 = vmatprep.subr.mxu1 %v1916_v0  ;;  %v1921_v2 = vld [vmem:[#allocation10 + $0x68] sm:$0xff]  ;;  %v1610_v3 = vld [vmem:[#allocation7 + $0x78] sm:$0xff]   ;;  %v1925_v4 = vld [vmem:[#allocation10] sm:$0xff] }
  0x36   :  { %1545 = vmatpush3.msra.mxu1 %v1916_v0  ;;  %v1927_v5 = vld [vmem:[#allocation10 + $0x8] sm:$0xff]  ;;  %v1929_v6 = vld [vmem:[#allocation10 + $0x10] sm:$0xff]  ;;  %v1932_v7 = vld [vmem:[#allocation10 + $0x60] sm:$0xff]  ;;  %1448 = vmatprep.subr.bf16.mxu0 %v1610_v3  ;;  %v626_v8 = vmul.f32 %v1925_v4, %v1925_v4  ;;  %v639_v61 = vmul.f32 %v1921_v2, %v1921_v2 }
  0x37   :  { %1546 = vmatprep.subr.mxu1 %v1918_v1  ;;  %v627_v9 = vmul.f32 %v1927_v5, %v1927_v5  ;;  %v628_v10 = vmul.f32 %v1929_v6, %v1929_v6  ;;  %v1941_v11 = vld [vmem:[#allocation10 + $0x58] sm:$0xff]  ;;  %v572_v13 = vld [vmem:[#allocation10 + $0x50] sm:$0xff]  ;;  %v1946_v14 = vld [vmem:[#allocation10 + $0x20] sm:$0xff]  ;;  %v638_v55 = vmul.f32 %v1932_v7, %v1932_v7 }
  0x38   :  { %1547 = vmatpush3.msra.mxu1 %v1918_v1  ;;  %v1943_v12 = vld [vmem:[#allocation10 + $0x18] sm:$0xff]  ;;  %v567_v17 = vld [vmem:[#allocation10 + $0x28] sm:$0xff]  ;;  %v630_v20 = vmul.f32 %v1946_v14, %v1946_v14  ;;  %v1612_v22 = vld [vmem:[#allocation7 + $0x70] sm:$0xff]   ;;  %v636_v47 = vmul.f32 %v572_v13, %v572_v13  ;;  %v637_v51 = vmul.f32 %v1941_v11, %v1941_v11 }
  0x39   :  { %1548 = vmatprep.subr.mxu1 %v1921_v2  ;;  %v629_v15 = vmul.f32 %v1943_v12, %v1943_v12  ;;  %v642_v16 = vadd.f32 %v627_v9, %v626_v8  ;;  %v1611_v18 = vld [vmem:[#allocation7 + $0x38] sm:$0xff]   ;;  %v571_v19 = vld [vmem:[#allocation10 + $0x48] sm:$0xff]  ;;  %v568_v23 = vld [vmem:[#allocation10 + $0x30] sm:$0xff]  ;;  %v631_v25 = vmul.f32 %v567_v17, %v567_v17  ;;  %v640_v8 = vmul.f32 %v1918_v1, %v1918_v1 }
  0x3a   :  { %1549 = vmatpush3.msra.mxu1 %v1921_v2  ;;  %1449 = vmatpush3.bf16.msra.mxu0 %v1611_v18  ;;  %v1613_v24 = vld [vmem:[#allocation7 + $0x30] sm:$0xff]   ;;  %v1614_v27 = vld [vmem:[#allocation7 + $0x68] sm:$0xff]   ;;  %v569_v28 = vld [vmem:[#allocation10 + $0x38] sm:$0xff]  ;;  %v632_v30 = vmul.f32 %v568_v23, %v568_v23  ;;  %v635_v42 = vmul.f32 %v571_v19, %v571_v19 }
  0x3b   :  { %1550 = vmatprep.subr.mxu1 %v1932_v7  ;;  %v643_v21 = vadd.f32 %v642_v16, %v628_v10  ;;  %1450 = vmatprep.subr.bf16.mxu0 %v1612_v22  ;;  %v570_v29 = vld [vmem:[#allocation10 + $0x40] sm:$0xff]  ;;  %v1615_v32 = vld [vmem:[#allocation7 + $0x28] sm:$0xff]   ;;  %v633_v33 = vmul.f32 %v569_v28, %v569_v28  ;;  %v1618_v41 = vld [vmem:[#allocation7 + $0x58] sm:$0xff]  }
  0x3c   :  { %1551 = vmatpush3.msra.mxu1 %v1932_v7  ;;  %v1616_v35 = vld [vmem:[#allocation7 + $0x60] sm:$0xff]   ;;  %v634_v37 = vmul.f32 %v570_v29, %v570_v29  ;;  %v1956_v44 = vld [vmem:[#allocation9 + $0x10] sm:$0xff]  ;;  %v547_v45 = vld [vmem:[#allocation9 + $0x8] sm:$0xff] }
  0x3d   :  { %1552 = vmatprep.subr.mxu1 %v1941_v11  ;;  %v644_v26 = vadd.f32 %v643_v21, %v629_v15  ;;  %v546_v36 = vld [vmem:[#allocation9] sm:$0xff]  ;;  %v580_v46 = vmul.f32 %v1956_v44, %v1956_v44  ;;  %v579_v49 = vmul.f32 %v547_v45, %v547_v45  ;;  %v1619_v50 = vld [vmem:[#allocation7 + $0x18] sm:$0xff]   ;;  %v1620_v53 = vld [vmem:[#allocation7 + $0x50] sm:$0xff]  }
  0x3e   :  { %1553 = vmatpush3.msra.mxu1 %v1941_v11  ;;  %1451 = vmatpush3.bf16.msra.mxu0 %v1613_v24  ;;  %v1617_v39 = vld [vmem:[#allocation7 + $0x20] sm:$0xff]   ;;  %v578_v40 = vmul.f32 %v546_v36, %v546_v36  ;;  %v549_v54 = vld [vmem:[#allocation9 + $0x18] sm:$0xff]  ;;  %v1621_v59 = vld [vmem:[#allocation7 + $0x10] sm:$0xff]   ;;  %v641_v11 = vmul.f32 %v1916_v0, %v1916_v0 }
  0x3f   :  { %1554 = vmatprep.subr.mxu1 %v572_v13  ;;  %v645_v31 = vadd.f32 %v644_v26, %v630_v20  ;;  %1452 = vmatprep.subr.bf16.mxu0 %v1614_v27  ;;  %v1628_v57 = vld [vmem:[#allocation4 + $0x4] ss:$8 sps:$4 sm:$0xff]   ;;  %v581_v58 = vmul.f32 %v549_v54, %v549_v54  ;;  %v553_v1 = vld [vmem:[#allocation9 + $0x38] sm:$0xff]  ;;  %v1626_v20 = vld [vmem:[#allocation4] ss:$8 sps:$4 sm:$0xff]  }
  0x40   :  { %1555 = vmatpush3.msra.mxu1 %v572_v13  ;;  %1576 = vmatprep.mubr.f32.mxu1 %v546_v36  ;;  %v1622_v60 = vld [vmem:[#allocation7 + $0x48] sm:$0xff]   ;;  %v550_v63 = vld [vmem:[#allocation9 + $0x20] sm:$0xff]  ;;  %v585_v16 = vmul.f32 %v553_v1, %v553_v1  ;;  %v556_v22 = vld [vmem:[#allocation9 + $0x50] sm:$0xff] }
  0x41   :  { %1556 = vmatprep.subr.mxu1 %v571_v19  ;;  %v646_v34 = vadd.f32 %v645_v31, %v631_v25  ;;  %594 = vadd.xlane.f32.xlu0 %v578_v40  ;;  %v551_v3 = vld [vmem:[#allocation9 + $0x28] sm:$0xff]  ;;  %v582_v7 = vmul.f32 %v550_v63, %v550_v63  ;;  %v1624_v13 = vld [vmem:[#allocation7 + $0x40] sm:$0xff]   ;;  %v588_v24 = vmul.f32 %v556_v22, %v556_v22 }
  0x42   :  { %1557 = vmatpush3.msra.mxu1 %v571_v19  ;;  %1453 = vmatpush3.bf16.msra.mxu0 %v1615_v32  ;;  %v583_v10 = vmul.f32 %v551_v3, %v551_v3  ;;  %v1623_v2 = vld [vmem:[#allocation7 + $0x8] sm:$0xff]   ;;  %v558_v26 = vld [vmem:[#allocation9 + $0x60] sm:$0xff]  ;;  %v560_v32 = vld [vmem:[#allocation9 + $0x70] sm:$0xff] }
  0x43   :  { %1558 = vmatprep.subr.mxu1 %v570_v29  ;;  %v647_v38 = vadd.f32 %v646_v34, %v632_v30  ;;  %1454 = vmatprep.subr.bf16.mxu0 %v1616_v35  ;;  %v555_v18 = vld [vmem:[#allocation9 + $0x48] sm:$0xff]  ;;  %v592_v34 = vmul.f32 %v560_v32, %v560_v32 }
  0x44   :  { %1559 = vmatpush3.msra.mxu1 %v570_v29  ;;  %598 = vadd.xlane.f32.xlu1 %v580_v46  ;;  %v587_v21 = vmul.f32 %v555_v18, %v555_v18  ;;  %v559_v27 = vld [vmem:[#allocation9 + $0x68] sm:$0xff]  ;;  %v1631_v29 = vld [vmem:[#allocation4 + $0x10] ss:$8 sps:$4 sm:$0xff]  }
  0x45   :  { %1560 = vmatprep.subr.mxu1 %v569_v28  ;;  %v648_v43 = vadd.f32 %v647_v38, %v633_v33  ;;  %596 = vadd.xlane.f32.xlu0 %v579_v49  ;;  %v591_v30 = vmul.f32 %v559_v27, %v559_v27  ;;  %v1632_v31 = vld [vmem:[#allocation4 + $0x24] ss:$8 sps:$4 sm:$0xff]   ;;  %v561_v33 = vld [vmem:[#allocation9 + $0x78] sm:$0xff]  ;;  %v1634_v36 = vld [vmem:[#allocation4 + $0x20] ss:$8 sps:$4 sm:$0xff]  }
  0x46   :  { %1561 = vmatpush3.msra.mxu1 %v569_v28  ;;  %1455 = vmatpush3.bf16.msra.mxu0 %v1617_v39  ;;  %v590_v28 = vmul.f32 %v558_v26, %v558_v26  ;;  %v593_v35 = vmul.f32 %v561_v33, %v561_v33  ;;  %v1637_v38 = vld [vmem:[#allocation4 + $0x30] ss:$8 sps:$4 sm:$0xff]   ;;  %v1638_v39 = vld [vmem:[#allocation4 + $0x44] ss:$8 sps:$4 sm:$0xff]   ;;  %v1640_v40 = vld [vmem:[#allocation4 + $0x40] ss:$8 sps:$4 sm:$0xff]  }
  0x47   :  { %1562 = vmatprep.subr.mxu1 %v568_v23  ;;  %v649_v48 = vadd.f32 %v648_v43, %v634_v37  ;;  %1456 = vmatprep.subr.bf16.mxu0 %v1618_v41  ;;  %v1635_v37 = vld [vmem:[#allocation4 + $0x34] ss:$8 sps:$4 sm:$0xff]   ;;  %v1644_v43 = vld [vmem:[#allocation4 + $0x64] ss:$8 sps:$4 sm:$0xff]   ;;  %v1649_v46 = vld [vmem:[#allocation4 + $0x70] ss:$8 sps:$4 sm:$0xff]  }
  0x48   :  { %1563 = vmatpush3.msra.mxu1 %v568_v23  ;;  %399 = vmatprep.mubr.bf16.mxu0 %v1628_v57  ;;  %v557_v23 = vld [vmem:[#allocation9 + $0x58] sm:$0xff] }
  0x49   :  { %1564 = vmatprep.subr.mxu1 %v567_v17  ;;  %v650_v52 = vadd.f32 %v649_v48, %v635_v42  ;;  %600 = vadd.xlane.f32.xlu1 %v581_v58  ;;  %v589_v25 = vmul.f32 %v557_v23, %v557_v23  ;;  %v1641_v41 = vld [vmem:[#allocation4 + $0x54] ss:$8 sps:$4 sm:$0xff]   ;;  %v1643_v42 = vld [vmem:[#allocation4 + $0x50] ss:$8 sps:$4 sm:$0xff]  }
  0x4a   :  { %1565 = vmatpush3.msra.mxu1 %v567_v17  ;;  %1457 = vmatpush3.bf16.msra.mxu0 %v1619_v50  ;;  %v1625_v17 = vld [vmem:[#allocation7] sm:$0xff]  }
  0x4b   :  { %1566 = vmatprep.subr.mxu1 %v1946_v14  ;;  %v651_v56 = vadd.f32 %v650_v52, %v636_v47  ;;  %1458 = vmatprep.subr.bf16.mxu0 %v1620_v53 }
  0x4c   :  { %1567 = vmatpush3.msra.mxu1 %v1946_v14  ;;  %v552_v14 = vld [vmem:[#allocation9 + $0x30] sm:$0xff]  ;;  %602 = vadd.xlane.f32.xlu0 %v582_v7 }
  0x4d   :  { %1568 = vmatprep.subr.mxu1 %v1943_v12  ;;  %v652_v62 = vadd.f32 %v651_v56, %v637_v51  ;;  %604 = vadd.xlane.f32.xlu1 %v583_v10 }
  0x4e   :  { %1569 = vmatpush3.msra.mxu1 %v1943_v12  ;;  %1459 = vmatpush3.bf16.msra.mxu0 %v1621_v59 }
  0x4f   :  { %1570 = vmatprep.subr.mxu1 %v1929_v6  ;;  %v653_v9 = vadd.f32 %v652_v62, %v638_v55  ;;  %1460 = vmatprep.subr.bf16.mxu0 %v1622_v60 }
  0x50   :  { %1571 = vmatpush3.msra.mxu1 %v1929_v6  ;;  %v584_v6 = vmul.f32 %v552_v14, %v552_v14 }
  0x51   :  { %1572 = vmatprep.subr.mxu1 %v1927_v5  ;;  %v654_v12 = vadd.f32 %v653_v9, %v639_v61  ;;  %608 = vadd.xlane.f32.xlu1 %v585_v16 }
  0x52   :  { %1573 = vmatpush3.msra.mxu1 %v1927_v5  ;;  %1461 = vmatpush3.bf16.msra.mxu0 %v1623_v2  ;;  %v554_v5 = vld [vmem:[#allocation9 + $0x40] sm:$0xff] }
  0x53   :  { %1574 = vmatprep.subr.mxu1 %v1925_v4  ;;  %v655_v15 = vadd.f32 %v654_v12, %v640_v8  ;;  %1462 = vmatprep.subr.bf16.mxu0 %v1624_v13  ;;  %v586_v19 = vmul.f32 %v554_v5, %v554_v5 }
  0x54   :  { %1575 = vmatpush3.msra.mxu1 %v1925_v4  ;;  %606 = vadd.xlane.f32.xlu0 %v584_v6  ;;  %v1629_v4 = vld [vmem:[#allocation4 + $0x14] ss:$8 sps:$4 sm:$0xff]  }
  0x55   :  { %1577 = vmatmul.mubr.f32.vlgmr.msra.gmra.mxu1 %v547_v45  ;;  %v1980_v0 = vadd.f32 %v655_v15, %v641_v11  ;;  %612 = vadd.xlane.f32.xlu1 %v587_v21  ;;  %v1647_v45 = vld [vmem:[#allocation4 + $0x74] ss:$8 sps:$4 sm:$0xff]  }
  0x56   :  { %1579 = vmatprep.mubr.f32.mxu1 %v1956_v44  ;;  %1463 = vmatpush3.bf16.msra.mxu0 %v1625_v17  ;;  %v1646_v44 = vld [vmem:[#allocation4 + $0x60] ss:$8 sps:$4 sm:$0xff]  }
  0x57   :  { %v657_v47 = vrot.slane %v1980_v0, 4 }
  0x58   :  { %610 = vadd.xlane.f32.xlu0 %v586_v19 }
  0x59   :  { %1580 = vmatmul.mubr.f32.gmra.mxu1 %v549_v54  ;;  %400 = vmatmul.mubr.bf16.vlgmr.msra.gmra.mxu0 %v1626_v20  ;;  %v658_v48 = vadd.f32 %v657_v47, %v1980_v0 }
  0x5a   :  { %1582 = vmatprep.mubr.f32.mxu1 %v550_v63  ;;  %407 = vmatprep.mubr.bf16.mxu0 %v1629_v4 }
  0x5b   :  { %616 = vadd.xlane.f32.xlu1 %v589_v25  ;;  %v659_v51 = vrot.slane %v658_v48, 2 }
  0x5c   :  { %614 = vadd.xlane.f32.xlu0 %v588_v24 }
  0x5d   :  { %1583 = vmatmul.mubr.f32.gmra.mxu1 %v551_v3  ;;  %v660_v54 = vadd.f32 %v659_v51, %v658_v48 }
  0x5e   :  { %1585 = vmatprep.mubr.f32.mxu1 %v552_v14 }
  0x5f   :  { %620 = vadd.xlane.f32.xlu1 %v591_v30  ;;  %v661_v56 = vrot.slane %v660_v54, 1 }
  0x60   :  { %618 = vadd.xlane.f32.xlu0 %v590_v28  ;;  %v1245_v28 = vlaneseq }
  0x61   :  { %1586 = vmatmul.mubr.f32.gmra.mxu1 %v553_v1  ;;  %408 = vmatmul.mubr.bf16.gmra.mxu0 %v1631_v29  ;;  %v1995_v58 = vadd.f32 %v661_v56, %v660_v54 }
  0x62   :  { %1588 = vmatprep.mubr.f32.mxu1 %v554_v5  ;;  %415 = vmatprep.mubr.bf16.mxu0 %v1632_v31 }
  0x63   :  { %624 = vadd.xlane.f32.xlu1 %v593_v35  ;;  %v920_v61 = vsub.f32 1.0, %v1995_v58 }
  0x64   :  { %622 = vadd.xlane.f32.xlu0 %v592_v34 }
  0x65   :  { %1589 = vmatmul.mubr.f32.gmra.mxu1 %v555_v18  ;;  %v921_v8 = vmax.f32 %v920_v61, 1e-12 }
  0x66   :  { %1591 = vmatprep.mubr.f32.mxu1 %v556_v22 }
  0x67   :  { %1650 = vrcp.f32 %v921_v8 }
  0x69   :  { %1592 = vmatmul.mubr.f32.gmra.mxu1 %v557_v23  ;;  %416 = vmatmul.mubr.bf16.gmra.mxu0 %v1634_v36 }
  0x6a   :  { %1594 = vmatprep.mubr.f32.mxu1 %v558_v26  ;;  %423 = vmatprep.mubr.bf16.mxu0 %v1635_v37 }
  0x6d   :  { %1595 = vmatmul.mubr.f32.gmra.mxu1 %v559_v27 }
  0x6e   :  { %1597 = vmatprep.mubr.f32.mxu1 %v560_v32  ;;  %v2021_v32 = vshrl.u32 %v1245_v28, 7 }
  0x70   :  { %v2064_v56 = vadd.s32 16, %v2021_v32 }
  0x71   :  { %1598 = vmatmul.mubr.f32.gmra.mxu1 %v561_v33  ;;  %424 = vmatmul.mubr.bf16.gmra.mxu0 %v1637_v38  ;;  %v2035_v38 = vstv %s2746_s4  ;;  %s1864_s4 = smov [#allocation12]  }
  0x72   :  { %431 = vmatprep.mubr.bf16.mxu0 %v1638_v39  ;;  %v2037_v39 = vand.u32 127, %v1245_v28  ;;  %s1386_s15 = sshll.u32 %s1864_s4, 4  ;;  %s1387_s15 = int_to_ptr.vmem [resolvable:$true] %s1386_s15 }
  0x73   :  { %s1828_s16 = scalar_lea.vmem %s1387_s15, 2048  ;;  %p1833_p7 = scmp.lt.s32.totalorder %s1387_s15, %s1387_s15 }
  0x74   :  { %v2025_v34 = vpop.eup %1650  ;;  %vm1300_vm14 = vcmp.lt.s32.totalorder %v2037_v39, 8  ;;  %p1829_p6 = scmp.ne.s32.totalorder %s1387_s15, %s1828_s16  ;;  %p1834_p8 = scmp.lt.s32.totalorder %s1828_s16, %s1828_s16 }
  0x76   :  { %p1835_p9 = por %p1834_p8, %p1833_p7 }
  0x78   :  { %p1836_p10 = pnand %p1835_p9, %p1829_p6 }
  0x79   :  { %432 = vmatmul.mubr.bf16.gmra.mxu0 %v1640_v40 }
  0x7a   :  { %439 = vmatprep.mubr.bf16.mxu0 %v1641_v41 }
  0x81   :  { %440 = vmatmul.mubr.bf16.gmra.mxu0 %v1643_v42 }
  0x82   :  { %447 = vmatprep.mubr.bf16.mxu0 %v1644_v43 }
  0x89   :  { %448 = vmatmul.mubr.bf16.gmra.mxu0 %v1646_v44 }
  0x8a   :  { %455 = vmatprep.mubr.bf16.mxu0 %v1647_v45 }
  0x91   :  { %456 = vmatmul.mubr.bf16.gmra.mxu0 %v1649_v46 }
  0xca   :  { %v595_v49 = vpop.xlane.xlu0 %594 }
  0xcb   :  { %v872_v62 = vsub.f32 1.0, %v595_v49  ;;  %v808_v35 = vadd.f32 %v1995_v58, %v595_v49 }
  0xcd   :  { %v1985_v50 = vpop.xlane.xlu1 %598  ;;  %v888_v10 = vmax.f32 %v872_v62, 1e-12 }
  0xce   :  { %v1987_v52 = vpop.xlane.xlu0 %596  ;;  %v874_v63 = vsub.f32 1.0, %v1985_v50  ;;  %v2030_v37 = vadd.f32 %v1995_v58, %v1985_v50  ;;  %v2053_v50 = vadd.s32 8, %v2021_v32 }
  0xcf   :  { %v873_v7 = vsub.f32 1.0, %v1987_v52  ;;  %1652 = vrcp.f32 %v888_v10  ;;  %v809_v42 = vadd.f32 %v1995_v58, %v1987_v52 }
  0xd0   :  { %v890_v11 = vmax.f32 %v874_v63, 1e-12  ;;  %vm1285_vm15 = vcmp.ge.s32.totalorder %v2037_v39, %v2053_v50 }
  0xd1   :  { %v889_v13 = vmax.f32 %v873_v7, 1e-12 }
  0xd2   :  { %v1989_v53 = vpop.xlane.xlu1 %600  ;;  %1654 = vrcp.f32 %v890_v11 }
  0xd3   :  { %v875_v2 = vsub.f32 1.0, %v1989_v53  ;;  %1656 = vrcp.f32 %v889_v13  ;;  %v811_v43 = vadd.f32 %v1995_v58, %v1989_v53 }
  0xd5   :  { %v1991_v55 = vpop.xlane.xlu0 %602  ;;  %v891_v15 = vmax.f32 %v875_v2, 1e-12 }
  0xd6   :  { %v1993_v57 = vpop.xlane.xlu1 %604  ;;  %v876_v12 = vsub.f32 1.0, %v1991_v55  ;;  %v2050_v48 = vadd.f32 %v1995_v58, %v1991_v55 }
  0xd7   :  { %v877_v14 = vsub.f32 1.0, %v1993_v57  ;;  %1658 = vrcp.f32 %v891_v15  ;;  %v2046_v47 = vadd.f32 %v1995_v58, %v1993_v57 }
  0xd8   :  { %v892_v17 = vmax.f32 %v876_v12, 1e-12 }
  0xd9   :  { %v893_v18 = vmax.f32 %v877_v14, 1e-12 }
  0xda   :  { %v1999_v60 = vpop.xlane.xlu1 %608  ;;  %1660 = vrcp.f32 %v892_v17 }
  0xdb   :  { %v879_v16 = vsub.f32 1.0, %v1999_v60  ;;  %1662 = vrcp.f32 %v893_v18  ;;  %v2057_v51 = vadd.f32 %v1995_v58, %v1999_v60 }
  0xdc   :  { %v1653_v36 = vpop.eup %1652 }
  0xdd   :  { %v1997_v59 = vpop.xlane.xlu0 %606  ;;  %v895_v4 = vmax.f32 %v879_v16, 1e-12  ;;  %v939_v61 = vmul.f32 %v1653_v36, %v2025_v34 }
  0xde   :  { %v2006_v9 = vpop.xlane.xlu1 %612  ;;  %v878_v1 = vsub.f32 1.0, %v1997_v59  ;;  %v2061_v53 = vadd.f32 %v1995_v58, %v1997_v59 }
  0xdf   :  { %v881_v19 = vsub.f32 1.0, %v2006_v9  ;;  %v1655_v41 = vpop.eup %1654  ;;  %v2069_v62 = vadd.f32 %v1995_v58, %v2006_v9 }
  0xe0   :  { %v894_v20 = vmax.f32 %v878_v1, 1e-12  ;;  %v1657_v46 = vpop.eup %1656  ;;  %v2077_v8 = vmul.f32 %v1655_v41, %v2025_v34 }
  0xe1   :  { %v2003_v3 = vpop.xlane.xlu0 %610  ;;  %v897_v25 = vmax.f32 %v881_v19, 1e-12  ;;  %v940_v59 = vmul.f32 %v1657_v46, %v2025_v34 }
  0xe2   :  { %v880_v0 = vsub.f32 1.0, %v2003_v3  ;;  %1664 = vrcp.f32 %v894_v20  ;;  %v2073_v60 = vadd.f32 %v1995_v58, %v2003_v3 }
  0xe3   :  { %1666 = vrcp.f32 %v895_v4 }
  0xe4   :  { %v2016_v5 = vpop.xlane.xlu1 %616  ;;  %v896_v23 = vmax.f32 %v880_v0, 1e-12  ;;  %v1659_v57 = vpop.eup %1658 }
  0xe5   :  { %v2012_v6 = vpop.xlane.xlu0 %614  ;;  %v883_v22 = vsub.f32 1.0, %v2016_v5  ;;  %v942_v14 = vmul.f32 %v1659_v57, %v2025_v34  ;;  %v2086_v1 = vadd.f32 %v1995_v58, %v2016_v5  ;;  %v2101_v5 = vadd.s32 24, %v2021_v32 }
  0xe6   :  { %v882_v21 = vsub.f32 1.0, %v2012_v6  ;;  %1668 = vrcp.f32 %v896_v23  ;;  %v2081_v9 = vadd.f32 %v1995_v58, %v2012_v6 }
  0xe7   :  { %v899_v29 = vmax.f32 %v883_v22, 1e-12  ;;  %1670 = vrcp.f32 %v897_v25  ;;  %v1661_v63 = vpop.eup %1660 }
  0xe8   :  { %v898_v26 = vmax.f32 %v882_v21, 1e-12  ;;  %v621_v27 = vpop.xlane.xlu1 %620  ;;  %v1663_v2 = vpop.eup %1662  ;;  %v2098_v22 = vmul.f32 %v1661_v63, %v2025_v34 }
  0xe9   :  { %v619_v24 = vpop.xlane.xlu0 %618  ;;  %v885_v31 = vsub.f32 1.0, %v621_v27  ;;  %v2092_v6 = vadd.f32 %v1995_v58, %v621_v27  ;;  %v2095_v4 = vmul.f32 %v1663_v2, %v2025_v34 }
  0xea   :  { %v884_v30 = vsub.f32 1.0, %v619_v24  ;;  %1672 = vrcp.f32 %v898_v26  ;;  %v2089_v15 = vadd.f32 %v1995_v58, %v619_v24 }
  0xeb   :  { %1674 = vrcp.f32 %v899_v29  ;;  %v901_v49 = vmax.f32 %v885_v31, 1e-12 }
  0xec   :  { %v625_v40 = vpop.xlane.xlu1 %624  ;;  %v900_v44 = vmax.f32 %v884_v30, 1e-12 }
  0xed   :  { %v2023_v33 = vpop.xlane.xlu0 %622  ;;  %v887_v54 = vsub.f32 1.0, %v625_v40 }
  0xee   :  { %v886_v45 = vsub.f32 1.0, %v2023_v33  ;;  %1676 = vrcp.f32 %v900_v44  ;;  %v2111_v36 = vadd.f32 %v1995_v58, %v2023_v33 }
  0xef   :  { %1678 = vrcp.f32 %v901_v49  ;;  %v1665_v13 = vpop.eup %1664  ;;  %v903_v16 = vmax.f32 %v887_v54, 1e-12 }
  0xf0   :  { %v902_v10 = vmax.f32 %v886_v45, 1e-12  ;;  %v1667_v17 = vpop.eup %1666  ;;  %v2104_v31 = vmul.f32 %v1665_v13, %v2025_v34 }
  0xf1   :  { %v2115_v54 = vmul.f32 %v1667_v17, %v2025_v34 }
  0xf2   :  { %1680 = vrcp.f32 %v902_v10 }
  0xf3   :  { %v1669_v20 = vpop.eup %1668  ;;  %1682 = vrcp.f32 %v903_v16 }
  0xf4   :  { %v1671_v23 = vpop.eup %1670  ;;  %v2121_v57 = vmul.f32 %v1669_v20, %v2025_v34 }
  0xf7   :  { %v1673_v27 = vpop.eup %1672 }
  0xf8   :  { %v1675_v41 = vpop.eup %1674 }
  0xf9   :  { %v2129_v2 = vmul.f32 %v1675_v41, %v2025_v34 }
  0xfb   :  { %v1677_v20 = vpop.eup %1676 }
 0x115   :  { %v1578_v52 = vpop.f32.mrf.mxu1 }
 0x116   :  { %v825_v55 = vmul.f32 2.0, %v1578_v52 }
 0x117   :  { %v729_v7 = vpop.f32.mrf.mxu1 }
 0x118   :  { %v841_v11 = vsub.f32 %v809_v42, %v825_v55  ;;  %v824_v12 = vmul.f32 2.0, %v729_v7 }
 0x119   :  { %v1581_v3 = vpop.f32.mrf.mxu1  ;;  %v1464_v29 = vpop.f32.mrf.mxu0 }
 0x11a   :  { %v857_v0 = vmax.f32 %v841_v11, 0.0  ;;  %v840_v18 = vsub.f32 %v808_v35, %v824_v12  ;;  %v827_v19 = vmul.f32 2.0, %v1581_v3  ;;  %v2107_v35 = vadd.f32 %v1995_v58, %v625_v40 }
 0x11b   :  { %v739_v21 = vpop.f32.mrf.mxu1  ;;  %v1465_v46 = vpop.f32.mrf.mxu0  ;;  %v2118_v40 = vmul.f32 %v1671_v23, %v2025_v34  ;;  %v2132_v11 = vmul.f32 %v1673_v27, %v2025_v34 }
 0x11c   :  { %v924_v24 = vmul.f32 2.0, %v857_v0  ;;  %v856_v25 = vmax.f32 %v840_v18, 0.0  ;;  %v843_v26 = vsub.f32 %v811_v43, %v827_v19  ;;  %v826_v28 = vmul.f32 2.0, %v739_v21 }
 0x11d   :  { %v1584_v30 = vpop.f32.mrf.mxu1  ;;  %v2141_v19 = vadd.f32 %v1465_v46, %v1464_v29 }
 0x11e   :  { %v956_v42 = vmul.f32 %v940_v59, %v924_v24  ;;  %v923_v44 = vmul.f32 2.0, %v856_v25  ;;  %v859_v45 = vmax.f32 %v843_v26, 0.0  ;;  %v842_v43 = vsub.f32 %v2030_v37, %v826_v28  ;;  %v2125_v59 = vpop.f32.mrf.mxu0  ;;  %v1679_v26 = vpop.eup %1678 }
 0x11f   :  { %v829_v49 = vmul.f32 2.0, %v1584_v30  ;;  %v749_v52 = vpop.f32.mrf.mxu1 }
 0x120   :  { %v2123_v58 = vadd.f32 1.0, %v956_v42  ;;  %v955_v33 = vmul.f32 %v939_v61, %v923_v44  ;;  %v926_v55 = vmul.f32 2.0, %v859_v45  ;;  %v858_v63 = vmax.f32 %v842_v43, 0.0  ;;  %v2138_v16 = vpop.f32.mrf.mxu0 }
 0x121   :  { %v845_v37 = vsub.f32 %v2046_v47, %v829_v49  ;;  %v828_v7 = vmul.f32 2.0, %v749_v52  ;;  %v1587_v10 = vpop.f32.mrf.mxu1 }
 0x122   :  { %v988_v12 = vmul.f32 %v2123_v58, %v2123_v58  ;;  %v2136_v13 = vadd.f32 1.0, %v955_v33  ;;  %v958_v61 = vmul.f32 %v942_v14, %v926_v55  ;;  %v925_v3 = vmul.f32 2.0, %v858_v63  ;;  %v2148_v14 = vpop.f32.mrf.mxu0  ;;  %v1681_v33 = vpop.eup %1680 }
 0x123   :  { %v861_v17 = vmax.f32 %v845_v37, 0.0  ;;  %v844_v47 = vsub.f32 %v2050_v48, %v828_v7  ;;  %v831_v0 = vmul.f32 2.0, %v1587_v10  ;;  %v759_v18 = vpop.f32.mrf.mxu1  ;;  %v2165_v55 = vmul.f32 %v1679_v26, %v2025_v34 }
 0x124   :  { %v1433_v21 = vadd.f32 -1.0, %v988_v12  ;;  %v987_v23 = vmul.f32 %v2136_v13, %v2136_v13  ;;  %v2145_v24 = vadd.f32 1.0, %v958_v61  ;;  %v957_v25 = vmul.f32 %v2077_v8, %v925_v3  ;;  %v2157_v43 = vpop.f32.mrf.mxu0  ;;  %v1683_v12 = vpop.eup %1682 }
 0x125   :  { %v928_v28 = vmul.f32 2.0, %v861_v17  ;;  %v860_v27 = vmax.f32 %v844_v47, 0.0  ;;  %v847_v48 = vsub.f32 %v2057_v51, %v831_v0  ;;  %v830_v30 = vmul.f32 2.0, %v759_v18  ;;  %v1590_v45 = vpop.f32.mrf.mxu1 }
 0x126   :  { %v2151_v41 = vadd.f32 1e-12, %v1433_v21  ;;  %v1432_v29 = vadd.f32 -1.0, %v987_v23  ;;  %v990_v42 = vmul.f32 %v2145_v24, %v2145_v24  ;;  %v2155_v44 = vadd.f32 1.0, %v957_v25  ;;  %v2162_v51 = vpop.f32.mrf.mxu0 }
 0x127   :  { %v960_v8 = vmul.f32 %v2095_v4, %v928_v28  ;;  %v927_v46 = vmul.f32 2.0, %v860_v27  ;;  %v863_v49 = vmax.f32 %v847_v48, 0.0  ;;  %v846_v52 = vsub.f32 %v2061_v53, %v830_v30  ;;  %v769_v0 = vpop.f32.mrf.mxu1 }
 0x128   :  { %1684 = vrsqrt.f32 %v2151_v41  ;;  %v2168_v63 = vmul.f32 %v1677_v20, %v2025_v34  ;;  %v2171_v37 = vadd.s32 32, %v2021_v32  ;;  %v2173_v7 = vadd.f32 1e-12, %v1432_v29  ;;  %v2180_v18 = vpop.f32.mrf.mxu0 }
 0x129   :  { %v1435_v4 = vadd.f32 -1.0, %v990_v42  ;;  %v989_v53 = vmul.f32 %v2155_v44, %v2155_v44  ;;  %v2177_v10 = vadd.f32 1.0, %v960_v8  ;;  %v959_v61 = vmul.f32 %v2098_v22, %v927_v46 }
 0x12a   :  { %v930_v3 = vmul.f32 2.0, %v863_v49  ;;  %v862_v17 = vmax.f32 %v846_v52, 0.0  ;;  %v833_v47 = vmul.f32 2.0, %v1590_v45  ;;  %1686 = vrsqrt.f32 %v2173_v7  ;;  %v2196_v27 = vpop.f32.mrf.mxu0 }
 0x12b   :  { %v514_v20 = vsub.f32 16.0, %v2141_v19  ;;  %v2185_v21 = vmul.f32 %v1681_v33, %v2025_v34  ;;  %v2188_v23 = vadd.s32 40, %v2021_v32  ;;  %v2190_v25 = vadd.f32 1e-12, %v1435_v4 }
 0x12c   :  { %v1434_v26 = vadd.f32 -1.0, %v989_v53  ;;  %v992_v22 = vmul.f32 %v2177_v10, %v2177_v10  ;;  %v2194_v28 = vadd.f32 1.0, %v959_v61  ;;  %v962_v48 = vmul.f32 %v2115_v54, %v930_v3  ;;  %v2204_v45 = vpop.f32.mrf.mxu0  ;;  %v1593_v53 = vpop.f32.mrf.mxu1 }
 0x12d   :  { %v929_v30 = vmul.f32 2.0, %v862_v17  ;;  %v849_v19 = vsub.f32 %v2069_v62, %v833_v47  ;;  %v832_v29 = vmul.f32 2.0, %v769_v0  ;;  %1688 = vrsqrt.f32 %v2190_v25 }
 0x12e   :  { %v2202_v42 = vmul.f32 %v1683_v12, %v2025_v34  ;;  %v2207_v8 = vadd.s32 48, %v2021_v32  ;;  %v2210_v46 = vadd.s32 56, %v2021_v32  ;;  %v2212_v49 = vadd.f32 1e-12, %v1434_v26 }
 0x12f   :  { %v1437_v54 = vadd.f32 -1.0, %v992_v22  ;;  %v991_v62 = vmul.f32 %v2194_v28, %v2194_v28  ;;  %v2216_v52 = vadd.f32 1.0, %v962_v48  ;;  %v961_v33 = vmul.f32 %v2104_v31, %v929_v30 }
 0x130   :  { %2750 = vst [vmem:[#allocation17_spill] sm:$0xff] %v2210_v46  ;;  %v865_v34 = vmax.f32 %v849_v19, 0.0  ;;  %v848_v4 = vsub.f32 %v2073_v60, %v832_v29  ;;  %v2221_v12 = vadd.s32 64, %v2021_v32  ;;  %vm1044_vm0 = vcmp.eq.f32.partialorder %v2151_v41, inf  ;;  %v2234_v60 = vpop.f32.mrf.mxu0 }
 0x131   :  { %vm1046_vm1 = vcmp.eq.f32.partialorder %v2151_v41, 0.0  ;;  %1690 = vrsqrt.f32 %v2212_v49  ;;  %v2226_v61 = vmul.f32 0.0625, %v514_v20  ;;  %v2228_v3 = vadd.f32 1e-12, %v1437_v54 }
 0x132   :  { %2751 = vst [vmem:[#allocation18_spill] sm:$0xff] %v2221_v12  ;;  %v1436_v17 = vadd.f32 -1.0, %v991_v62  ;;  %v994_v31 = vmul.f32 %v2216_v52, %v2216_v52  ;;  %v2232_v47 = vadd.f32 1.0, %v961_v33  ;;  %v1047_v0 = vand.u32 2147483648, %v2151_v41 }
 0x133   :  { %v932_v26 = vmul.f32 2.0, %v865_v34  ;;  %v864_v22 = vmax.f32 %v848_v4, 0.0  ;;  %v835_v48 = vmul.f32 2.0, %v1593_v53  ;;  %vm1037_vm2 = vcmp.eq.f32.partialorder %v2173_v7, inf  ;;  %v2250_v53 = vpop.f32.mrf.mxu0 }
 0x134   :  { %vm1039_vm3 = vcmp.eq.f32.partialorder %v2173_v7, 0.0  ;;  %1692 = vrsqrt.f32 %v2228_v3  ;;  %v1469_v20 = vadd.f32 %v2138_v16, %v2125_v59  ;;  %v2242_v19 = vadd.f32 1e-12, %v1436_v17 }
 0x135   :  { %v1685_v30 = vpop.eup %1684  ;;  %v1439_v29 = vadd.f32 -1.0, %v994_v31  ;;  %v993_v54 = vmul.f32 %v2232_v47, %v2232_v47  ;;  %v964_v62 = vmul.f32 %v2118_v40, %v932_v26  ;;  %v1040_v34 = vand.u32 2147483648, %v2173_v7 }
 0x136   :  { %v1043_v33 = vmul.f32 %v1685_v30, %v2151_v41  ;;  %vm1058_vm4 = vcmp.eq.f32.partialorder %v2190_v25, inf  ;;  %v931_v4 = vmul.f32 2.0, %v864_v22  ;;  %vm1060_vm5 = vcmp.eq.f32.partialorder %v2190_v25, 0.0 }
 0x137   :  { %v1061_v59 = vand.u32 2147483648, %v2190_v25  ;;  %1694 = vrsqrt.f32 %v2242_v19  ;;  %v851_v16 = vsub.f32 %v2086_v1, %v835_v48  ;;  %v1687_v17 = vpop.eup %1686  ;;  %vm1051_vm6 = vcmp.eq.f32.partialorder %v2212_v49, inf }
 0x138   :  { %v1045_v40 = vsel %vm1044_vm0, %v2151_v41, %v1043_v33  ;;  %v2260_v31 = vadd.f32 1e-12, %v1439_v29  ;;  %v1438_v26 = vadd.f32 -1.0, %v993_v54  ;;  %v2262_v22 = vadd.f32 1.0, %v964_v62  ;;  %v2272_v29 = vpop.f32.mrf.mxu0 }
 0x139   :  { %v1048_v30 = vsel %vm1046_vm1, %v1047_v0, %v1045_v40  ;;  %v1036_v12 = vmul.f32 %v1687_v17, %v2173_v7  ;;  %v963_v46 = vmul.f32 %v2121_v57, %v931_v4  ;;  %v515_v1 = vsub.f32 16.0, %v1469_v20 }
 0x13a   :  { %v1148_v48 = vadd.f32 %v1048_v30, %v2123_v58  ;;  %vm1053_vm7 = vcmp.eq.f32.partialorder %v2212_v49, 0.0  ;;  %v1054_v33 = vand.u32 2147483648, %v2212_v49  ;;  %1696 = vrsqrt.f32 %v2260_v31  ;;  %v1689_v54 = vpop.eup %1688 }
 0x13b   :  { %v1038_v41 = vsel %vm1037_vm2, %v2173_v7, %v1036_v12  ;;  %vm1072_vm8 = vcmp.eq.f32.partialorder %v2228_v3, inf  ;;  %v2278_v0 = vadd.f32 1e-12, %v1438_v26  ;;  %v996_v57 = vmul.f32 %v2262_v22, %v2262_v22 }
 0x13c   :  { %v867_v58 = vmax.f32 %v851_v16, 0.0  ;;  %1698 = vlog2.f32 %v1148_v48  ;;  %v1041_v20 = vsel %vm1039_vm3, %v1040_v34, %v1038_v41  ;;  %v1057_v62 = vmul.f32 %v1689_v54, %v2190_v25  ;;  %v2299_v16 = vpop.f32.mrf.mxu0 }
 0x13d   :  { %v2285_v4 = vadd.f32 1.0, %v963_v46  ;;  %v1147_v17 = vadd.f32 %v1041_v20, %v2136_v13  ;;  %vm1074_vm9 = vcmp.eq.f32.partialorder %v2228_v3, 0.0  ;;  %v1075_v12 = vand.u32 2147483648, %v2228_v3  ;;  %v779_v13 = vpop.f32.mrf.mxu1 }
 0x13e   :  { %1700 = vrsqrt.f32 %v2278_v0  ;;  %v2291_v40 = vmul.f32 0.0625, %v515_v1  ;;  %v1691_v26 = vpop.eup %1690  ;;  %v1059_v7 = vsel %vm1058_vm4, %v2190_v25, %v1057_v62  ;;  %vm1065_vm10 = vcmp.eq.f32.partialorder %v2242_v19, inf }
 0x13f   :  { %v1441_v34 = vadd.f32 -1.0, %v996_v57  ;;  %v995_v46 = vmul.f32 %v2285_v4, %v2285_v4  ;;  %1702 = vlog2.f32 %v1147_v17  ;;  %v1062_v30 = vsel %vm1060_vm5, %v1061_v59, %v1059_v7  ;;  %v2317_v7 = vpop.f32.mrf.mxu0 }
 0x140   :  { %v1050_v1 = vmul.f32 %v1691_v26, %v2212_v49  ;;  %v934_v48 = vmul.f32 2.0, %v867_v58  ;;  %v1150_v54 = vadd.f32 %v1062_v30, %v2145_v24  ;;  %vm1067_vm11 = vcmp.eq.f32.partialorder %v2242_v19, 0.0  ;;  %v1596_v26 = vpop.f32.mrf.mxu1 }
 0x141   :  { %v2306_v41 = vadd.f32 1e-12, %v1441_v34  ;;  %v1440_v57 = vadd.f32 -1.0, %v995_v46  ;;  %v1693_v20 = vpop.eup %1692  ;;  %v1068_v17 = vand.u32 2147483648, %v2242_v19  ;;  %v834_v59 = vmul.f32 2.0, %v779_v13 }
 0x142   :  { %v1052_v62 = vsel %vm1051_vm6, %v2212_v49, %v1050_v1  ;;  %v966_v25 = vmul.f32 %v2129_v2, %v934_v48  ;;  %1704 = vlog2.f32 %v1150_v54  ;;  %v1071_v24 = vmul.f32 %v1693_v20, %v2228_v3 }
 0x143   :  { %v1055_v58 = vsel %vm1053_vm7, %v1054_v33, %v1052_v62  ;;  %vm1086_vm12 = vcmp.eq.f32.partialorder %v2260_v31, inf  ;;  %vm1088_vm13 = vcmp.eq.f32.partialorder %v2260_v31, 0.0  ;;  %v1089_v46 = vand.u32 2147483648, %v2260_v31 }
 0x144   :  { %v1149_v34 = vadd.f32 %v1055_v58, %v2155_v44  ;;  %1706 = vrsqrt.f32 %v2306_v41  ;;  %v1695_v2 = vpop.eup %1694  ;;  %v1073_v49 = vsel %vm1072_vm8, %v2228_v3, %v1071_v24  ;;  %v2327_v33 = vadd.f32 1e-12, %v1440_v57  ;;  %v2342_v57 = vpop.f32.mrf.mxu0 }
 0x145   :  { %v2331_v13 = vadd.f32 1.0, %v966_v25  ;;  %v1472_v44 = vadd.f32 %v2157_v43, %v2148_v14  ;;  %v1064_v30 = vmul.f32 %v1695_v2, %v2242_v19  ;;  %v850_v1 = vsub.f32 %v2081_v9, %v834_v59 }
 0x146   :  { %1708 = vlog2.f32 %v1149_v34  ;;  %v837_v48 = vmul.f32 2.0, %v1596_v26  ;;  %v1076_v54 = vsel %vm1074_vm9, %v1075_v12, %v1073_v49  ;;  %vm1079_vm0 = vcmp.eq.f32.partialorder %v2278_v0, inf  ;;  %vm2401_vm9 = vmand %vm1285_vm15, %vm1300_vm14 }
 0x147   :  { %vm1081_vm1 = vcmp.eq.f32.partialorder %v2278_v0, 0.0  ;;  %1710 = vrsqrt.f32 %v2327_v33  ;;  %v1697_v20 = vpop.eup %1696  ;;  %v1066_v14 = vsel %vm1065_vm10, %v2242_v19, %v1064_v30  ;;  %v1082_v43 = vand.u32 2147483648, %v2278_v0 }
 0x148   :  { %vm1284_vm2 = vcmp.ge.s32.totalorder %v2037_v39, %v2021_v32  ;;  %v1103_v9 = vand.u32 2147483648, %v2306_v41  ;;  %v998_v3 = vmul.f32 %v2331_v13, %v2331_v13  ;;  %v1069_v12 = vsel %vm1067_vm11, %v1068_v17, %v1066_v14 }
 0x149   :  { %v1085_v62 = vmul.f32 %v1697_v20, %v2260_v31  ;;  %v516_v25 = vsub.f32 16.0, %v1472_v44  ;;  %v866_v59 = vmax.f32 %v850_v1, 0.0  ;;  %v1699_v58 = vpop.eup %1698  ;;  %v1152_v24 = vadd.f32 %v1076_v54, %v2177_v10  ;;  %v2364_v1 = vpop.f32.mrf.mxu0  ;;  %vm2416_vm10 = vmand %vm1284_vm2, %vm1300_vm14 }
 0x14a   :  { %v1151_v26 = vadd.f32 %v1069_v12, %v2194_v28  ;;  %v1443_v34 = vadd.f32 -1.0, %v998_v3  ;;  %v853_v2 = vsub.f32 %v2092_v6, %v837_v48  ;;  %vm1100_vm3 = vcmp.eq.f32.partialorder %v2306_v41, inf  ;;  %v789_v48 = vpop.f32.mrf.mxu1 }
 0x14b   :  { %v1701_v49 = vpop.eup %1700  ;;  %v1087_v30 = vsel %vm1086_vm12, %v2260_v31, %v1085_v62  ;;  %v1096_v19 = vand.u32 2147483648, %v2327_v33  ;;  %v1166_v17 = vmul.f32 0.6931472, %v1699_v58  ;;  %v933_v44 = vmul.f32 2.0, %v866_v59 }
 0x14c   :  { %1712 = vlog2.f32 %v1151_v26  ;;  %v1078_v10 = vmul.f32 %v1701_v49, %v2278_v0  ;;  %vm1102_vm4 = vcmp.eq.f32.partialorder %v2306_v41, 0.0  ;;  %v2368_v28 = vadd.f32 1e-12, %v1443_v34  ;;  %v1703_v54 = vpop.eup %1702 }
 0x14d   :  { %v1475_v6 = vadd.f32 %v2180_v18, %v2162_v51  ;;  %vm1287_vm5 = vcmp.ge.s32.totalorder %v2037_v39, %v2101_v5  ;;  %v1090_v20 = vsel %vm1088_vm13, %v1089_v46, %v1087_v30  ;;  %v1198_v14 = vmul.f32 %v2035_v38, %v1166_v17  ;;  %v2391_v46 = vpop.f32.mrf.mxu0 }
 0x14e   :  { %v965_v3 = vmul.f32 %v2132_v11, %v933_v44  ;;  %v869_v12 = vmax.f32 %v853_v2, 0.0  ;;  %v1080_v62 = vsel %vm1079_vm0, %v2278_v0, %v1078_v10  ;;  %v1164_v59 = vmul.f32 0.6931472, %v1703_v54  ;;  %vm2452_vm11 = vmand %vm1287_vm5, %vm1300_vm14 }
 0x14f   :  { %vm1093_vm6 = vcmp.eq.f32.partialorder %v2327_v33, inf  ;;  %1714 = vrsqrt.f32 %v2368_v28  ;;  %v532_v51 = vmul.f32 0.0625, %v516_v25  ;;  %vm1286_vm7 = vcmp.ge.s32.totalorder %v2037_v39, %v2064_v56  ;;  %v1705_v58 = vpop.eup %1704  ;;  %v2424_v54 = vpop.f32.mrf.mxu0 }
 0x150   :  { %1716 = vlog2.f32 %v1152_v24  ;;  %v1083_v18 = vsel %vm1081_vm1, %v1082_v43, %v1080_v62  ;;  %vm1095_vm8 = vcmp.eq.f32.partialorder %v2327_v33, 0.0  ;;  %v1214_v11 = vsub.f32 %v2291_v40, %v1198_v14  ;;  %vm2469_vm13 = vmand %vm1286_vm7, %vm1300_vm14 }
 0x151   :  { %v2389_v31 = vmul.f32 2.0, %v789_v48  ;;  %v1154_v26 = vadd.f32 %v1090_v20, %v2216_v52  ;;  %v1153_v25 = vadd.f32 %v1083_v18, %v2232_v47  ;;  %v1197_v34 = vmul.f32 %v2035_v38, %v1164_v59  ;;  %v1707_v43 = vpop.eup %1706 }
 0x152   :  { %v2405_v40 = vadd.f32 1.0, %v965_v3  ;;  %v1230_v24 = vmul.f32 %v1214_v11, %v1214_v11  ;;  %v936_v2 = vmul.f32 2.0, %v869_v12  ;;  %v517_v49 = vsub.f32 16.0, %v1475_v6 }
 0x153   :  { %v1170_v52 = vmul.f32 0.6931472, %v1705_v58  ;;  %1718 = vlog2.f32 %v1153_v25  ;;  %v1213_v47 = vsub.f32 %v2226_v61, %v1197_v34  ;;  %v1099_v30 = vmul.f32 %v1707_v43, %v2306_v41  ;;  %v1709_v50 = vpop.eup %1708  ;;  %v2456_v43 = vpop.f32.mrf.mxu0 }
 0x154   :  { %v997_v17 = vmul.f32 %v2405_v40, %v2405_v40  ;;  %v1318_v10 = vsel %vm2401_vm9, %v1230_v24, 0.0  ;;  %v968_v61 = vmul.f32 %v2165_v55, %v936_v2  ;;  %v533_v6 = vmul.f32 0.0625, %v517_v49  ;;  %v1711_v20 = vpop.eup %1710 }
 0x155   :  { %v1200_v48 = vmul.f32 %v2035_v38, %v1170_v52  ;;  %v1229_v14 = vmul.f32 %v1213_v47, %v1213_v47  ;;  %v1101_v3 = vsel %vm1100_vm3, %v2306_v41, %v1099_v30  ;;  %v1168_v12 = vmul.f32 0.6931472, %v1709_v50  ;;  %1366 = vst [vmem:[#allocation12 + $0x8] sm:$0xff] %v1318_v10  ;;  %v1599_v52 = vpop.f32.mrf.mxu1  ;;  %v2484_v10 = vpop.f32.mrf.mxu0 }
 0x156   :  { %v1104_v62 = vsel %vm1102_vm4, %v1103_v9, %v1101_v3  ;;  %v1092_v59 = vmul.f32 %v1711_v20, %v2327_v33  ;;  %v1442_v55 = vadd.f32 -1.0, %v997_v17  ;;  %v2434_v18 = vadd.f32 1.0, %v968_v61 }
 0x157   :  { %v1317_v11 = vsel %vm2416_vm10, %v1229_v14, 0.0  ;;  %v1156_v58 = vadd.f32 %v1104_v62, %v2262_v22  ;;  %v1199_v25 = vmul.f32 %v2035_v38, %v1168_v12  ;;  %v1216_v34 = vsub.f32 %v533_v6, %v1200_v48 }
 0x158   :  { %v1094_v0 = vsel %vm1093_vm6, %v2327_v33, %v1092_v59  ;;  %v2443_v41 = vadd.f32 1e-12, %v1442_v55  ;;  %v1000_v9 = vmul.f32 %v2434_v18, %v2434_v18  ;;  %1720 = vlog2.f32 %v1154_v26  ;;  %1365 = vst [vmem:[#allocation12] sm:$0xff] %v1317_v11  ;;  %v2506_v55 = vpop.f32.mrf.mxu0 }
 0x159   :  { %v1097_v24 = vsel %vm1095_vm8, %v1096_v19, %v1094_v0  ;;  %v1215_v2 = vsub.f32 %v532_v51, %v1199_v25  ;;  %v1232_v49 = vmul.f32 %v1216_v34, %v1216_v34  ;;  %v1713_v47 = vpop.eup %1712  ;;  %vm1114_vm12 = vcmp.eq.f32.partialorder %v2368_v28, inf }
 0x15a   :  { %v1117_v5 = vand.u32 2147483648, %v2368_v28  ;;  %1722 = vrsqrt.f32 %v2443_v41  ;;  %v2475_v33 = vadd.s32 72, %v2021_v32  ;;  %v1445_v51 = vadd.f32 -1.0, %v1000_v9  ;;  %v2523_v26 = vpop.f32.mrf.mxu0 }
 0x15b   :  { %1724 = vlog2.f32 %v1156_v58  ;;  %v1231_v19 = vmul.f32 %v1215_v2, %v1215_v2  ;;  %v1320_v30 = vsel %vm2452_vm11, %v1232_v49, 0.0  ;;  %vm1288_vm15 = vcmp.ge.s32.totalorder %v2037_v39, %v2171_v37 }
 0x15c   :  { %v1715_v17 = vpop.eup %1714  ;;  %v1155_v56 = vadd.f32 %v1097_v24, %v2285_v4  ;;  %v852_v50 = vsub.f32 %v2089_v15, %v2389_v31  ;;  %v839_v44 = vmul.f32 2.0, %v1599_v52  ;;  %v2489_v20 = vadd.f32 1e-12, %v1445_v51  ;;  %1368 = vst [vmem:[#allocation12 + $0x18] sm:$0xff] %v1320_v30  ;;  %v799_v15 = vpop.f32.mrf.mxu1  ;;  %vm2534_vm5 = vmand %vm1288_vm15, %vm1300_vm14 }
 0x15d   :  { %v1717_v61 = vpop.eup %1716  ;;  %v1113_v6 = vmul.f32 %v1715_v17, %v2368_v28  ;;  %v1319_v48 = vsel %vm2469_vm13, %v1231_v19, 0.0  ;;  %v1478_v14 = vadd.f32 %v2204_v45, %v2196_v27  ;;  %v1172_v12 = vmul.f32 0.6931472, %v1713_v47  ;;  %v2542_v37 = vpop.f32.mrf.mxu0 }
 0x15e   :  { %v868_v3 = vmax.f32 %v852_v50, 0.0  ;;  %v855_v4 = vsub.f32 %v2107_v35, %v839_v44  ;;  %vm1116_vm0 = vcmp.eq.f32.partialorder %v2368_v28, 0.0  ;;  %1726 = vrsqrt.f32 %v2489_v20  ;;  %1367 = vst [vmem:[#allocation12 + $0x10] sm:$0xff] %v1319_v48 }
 0x15f   :  { %v1115_v31 = vsel %vm1114_vm12, %v2368_v28, %v1113_v6  ;;  %vm1289_vm1 = vcmp.ge.s32.totalorder %v2037_v39, %v2188_v23  ;;  %v2502_v62 = vadd.s32 80, %v2021_v32  ;;  %1728 = vlog2.f32 %v1155_v56 }
 0x160   :  { %v1719_v27 = vpop.eup %1718  ;;  %v1118_v45 = vsel %vm1116_vm0, %v1117_v5, %v1115_v31  ;;  %v935_v35 = vmul.f32 2.0, %v868_v3  ;;  %v871_v59 = vmax.f32 %v855_v4, 0.0  ;;  %vm1290_vm2 = vcmp.ge.s32.totalorder %v2037_v39, %v2207_v8  ;;  %vm2559_vm6 = vmand %vm1289_vm1, %vm1300_vm14 }
 0x161   :  { %v1158_v28 = vadd.f32 %v1118_v45, %v2331_v13  ;;  %vm1107_vm3 = vcmp.eq.f32.partialorder %v2443_v41, inf  ;;  %v518_v11 = vsub.f32 16.0, %v1478_v14  ;;  %v1201_v58 = vmul.f32 %v2035_v38, %v1172_v12  ;;  %vm2572_vm7 = vmand %vm1290_vm2, %vm1300_vm14 }
 0x162   :  { %v838_v25 = vmul.f32 2.0, %v799_v15  ;;  %vm1109_vm4 = vcmp.eq.f32.partialorder %v2443_v41, 0.0  ;;  %v967_v34 = vmul.f32 %v2168_v63, %v935_v35  ;;  %v938_v0 = vmul.f32 2.0, %v871_v59 }
 0x163   :  { %v1481_v9 = vadd.f32 %v2250_v53, %v2234_v60  ;;  %v1174_v22 = vmul.f32 0.6931472, %v1717_v61  ;;  %v1110_v24 = vand.u32 2147483648, %v2443_v41  ;;  %v534_v2 = vmul.f32 0.0625, %v518_v11 }
 0x164   :  { %v854_v13 = vsub.f32 %v2111_v36, %v838_v25  ;;  %v1484_v49 = vadd.f32 %v2299_v16, %v2272_v29  ;;  %v2519_v52 = vadd.f32 1.0, %v967_v34  ;;  %v970_v47 = vmul.f32 %v2202_v42, %v938_v0  ;;  %v2583_v0 = vpop.f32.mrf.mxu0 }
 0x165   :  { %v519_v5 = vsub.f32 16.0, %v1481_v9  ;;  %v1202_v63 = vmul.f32 %v2035_v38, %v1174_v22  ;;  %v1217_v19 = vsub.f32 %v534_v2, %v1201_v58  ;;  %v1176_v51 = vmul.f32 0.6931472, %v1719_v27  ;;  %v1721_v30 = vpop.eup %1720 }
 0x166   :  { %v870_v60 = vmax.f32 %v854_v13, 0.0  ;;  %v520_v53 = vsub.f32 16.0, %v1484_v49  ;;  %1730 = vlog2.f32 %v1158_v28  ;;  %v999_v36 = vmul.f32 %v2519_v52, %v2519_v52 }
 0x167   :  { %v2527_v17 = vadd.f32 1.0, %v970_v47  ;;  %v535_v29 = vmul.f32 0.0625, %v519_v5  ;;  %v1723_v16 = vpop.eup %1722  ;;  %v1233_v56 = vmul.f32 %v1217_v19, %v1217_v19  ;;  %v1203_v61 = vmul.f32 %v2035_v38, %v1176_v51  ;;  %v2767_v19 = vld [vmem:[#allocation18_spill] sm:$0xff] }
 0x168   :  { %v937_v50 = vmul.f32 2.0, %v870_v60  ;;  %v536_v44 = vmul.f32 0.0625, %v520_v53  ;;  %v1725_v6 = vpop.eup %1724  ;;  %v1106_v48 = vmul.f32 %v1723_v16, %v2443_v41  ;;  %v1444_v14 = vadd.f32 -1.0, %v999_v36  ;;  %v2601_v60 = vpop.f32.mrf.mxu0 }
 0x169   :  { %v1002_v3 = vmul.f32 %v2527_v17, %v2527_v17  ;;  %v1218_v4 = vsub.f32 %v535_v29, %v1202_v63  ;;  %v1321_v12 = vsel %vm2534_vm5, %v1233_v56, 0.0  ;;  %v1487_v27 = vadd.f32 %v2342_v57, %v2317_v7 }
 0x16a   :  { %v969_v15 = vmul.f32 %v2185_v21, %v937_v50  ;;  %v1219_v31 = vsub.f32 %v536_v44, %v1203_v61  ;;  %v1108_v45 = vsel %vm1107_vm3, %v2443_v41, %v1106_v48  ;;  %v2552_v35 = vadd.f32 1e-12, %v1444_v14  ;;  %1369 = vst [vmem:[#allocation12 + $0x20] sm:$0xff] %v1321_v12  ;;  %v2766_v41 = vld [vmem:[#allocation17_spill] sm:$0xff] }
 0x16b   :  { %v1447_v59 = vadd.f32 -1.0, %v1002_v3  ;;  %v1111_v21 = vsel %vm1109_vm4, %v1110_v24, %v1108_v45  ;;  %v1234_v57 = vmul.f32 %v1218_v4, %v1218_v4  ;;  %v1727_v23 = vpop.eup %1726  ;;  %vm1291_vm8 = vcmp.ge.s32.totalorder %v2037_v39, %v2766_v41 }
 0x16c   :  { %v2565_v7 = vadd.f32 1.0, %v969_v15  ;;  %v1235_v11 = vmul.f32 %v1219_v31, %v1219_v31  ;;  %v1157_v25 = vadd.f32 %v1111_v21, %v2405_v40  ;;  %1732 = vrsqrt.f32 %v2552_v35  ;;  %v1729_v9 = vpop.eup %1728  ;;  %vm2624_vm15 = vmand %vm1291_vm8, %vm1300_vm14 }
 0x16d   :  { %v2581_v34 = vadd.s32 88, %v2021_v32  ;;  %v1127_v8 = vmul.f32 %v1727_v23, %v2489_v20  ;;  %vm1128_vm9 = vcmp.eq.f32.partialorder %v2489_v20, inf  ;;  %v2587_v22 = vadd.f32 1e-12, %v1447_v59 }
 0x16e   :  { %v1001_v40 = vmul.f32 %v2565_v7, %v2565_v7  ;;  %1734 = vlog2.f32 %v1157_v25  ;;  %v1131_v24 = vand.u32 2147483648, %v2489_v20  ;;  %v1322_v2 = vsel %vm2559_vm6, %v1234_v57, 0.0 }
 0x16f   :  { %v1323_v13 = vsel %vm2572_vm7, %v1235_v11, 0.0  ;;  %v1129_v49 = vsel %vm1128_vm9, %v2489_v20, %v1127_v8  ;;  %vm1130_vm10 = vcmp.eq.f32.partialorder %v2489_v20, 0.0  ;;  %1736 = vrsqrt.f32 %v2587_v22  ;;  %1370 = vst [vmem:[#allocation12 + $0x28] sm:$0xff] %v1322_v2 }
 0x170   :  { %v521_v47 = vsub.f32 16.0, %v1487_v27  ;;  %v1132_v5 = vsel %vm1130_vm10, %v1131_v24, %v1129_v49  ;;  %v1446_v63 = vadd.f32 -1.0, %v1001_v40  ;;  %vm1292_vm11 = vcmp.ge.s32.totalorder %v2037_v39, %v2767_v19  ;;  %1371 = vst [vmem:[#allocation12 + $0x30] sm:$0xff] %v1323_v13 }
 0x171   :  { %v1160_v53 = vadd.f32 %v1132_v5, %v2434_v18  ;;  %v1178_v51 = vmul.f32 0.6931472, %v1721_v30  ;;  %v1490_v36 = vadd.f32 %v2391_v46, %v2364_v1  ;;  %v1180_v20 = vmul.f32 0.6931472, %v1729_v9  ;;  %v1503_v46 = vpop.f32.mrf.mxu0  ;;  %vm2644_vm3 = vmand %vm1292_vm11, %vm1300_vm14 }
 0x172   :  { %v2606_v42 = vadd.f32 1e-12, %v1446_v63  ;;  %v1493_v29 = vadd.f32 %v2456_v43, %v2424_v54  ;;  %v1182_v16 = vmul.f32 0.6931472, %v1725_v6  ;;  %v537_v50 = vmul.f32 0.0625, %v521_v47 }
 0x173   :  { %v1731_v56 = vpop.eup %1730  ;;  %1738 = vlog2.f32 %v1160_v53  ;;  %v1204_v44 = vmul.f32 %v2035_v38, %v1178_v51  ;;  %v522_v61 = vsub.f32 16.0, %v1490_v36  ;;  %vm1293_vm12 = vcmp.ge.s32.totalorder %v2037_v39, %v2475_v33  ;;  %v1504_v27 = vpop.f32.mrf.mxu0 }
 0x174   :  { %1740 = vrsqrt.f32 %v2606_v42  ;;  %v1496_v1 = vadd.f32 %v2506_v55, %v2484_v10  ;;  %vm1295_vm13 = vcmp.ge.s32.totalorder %v2037_v39, %v2581_v34  ;;  %v1205_v43 = vmul.f32 %v2035_v38, %v1180_v20  ;;  %vm2658_vm5 = vmand %vm1293_vm12, %vm1300_vm14 }
 0x175   :  { %v1220_v54 = vsub.f32 %v537_v50, %v1204_v44  ;;  %v538_v18 = vmul.f32 0.0625, %v522_v61  ;;  %v523_v30 = vsub.f32 16.0, %v1493_v29  ;;  %v1206_v10 = vmul.f32 %v2035_v38, %v1182_v16  ;;  %v1506_v49 = vpop.f32.mrf.mxu0  ;;  %vm2678_vm6 = vmand %vm1295_vm13, %vm1300_vm14 }
 0x176   :  { %vm1294_vm0 = vcmp.ge.s32.totalorder %v2037_v39, %v2502_v62  ;;  %v1499_v55 = vadd.f32 %v2542_v37, %v2523_v26  ;;  %v1186_v48 = vmul.f32 0.6931472, %v1731_v56  ;;  %v2634_v14 = vadd.s32 104, %v2021_v32 }
 0x177   :  { %vm1121_vm1 = vcmp.eq.f32.partialorder %v2552_v35, inf  ;;  %v1236_v3 = vmul.f32 %v1220_v54, %v1220_v54  ;;  %v1221_v4 = vsub.f32 %v538_v18, %v1205_v43  ;;  %v539_v12 = vmul.f32 0.0625, %v523_v30  ;;  %vm2696_vm8 = vmand %vm1294_vm0, %vm1300_vm14 }
 0x178   :  { %vm1123_vm2 = vcmp.eq.f32.partialorder %v2552_v35, 0.0  ;;  %v1124_v15 = vand.u32 2147483648, %v2552_v35  ;;  %v525_v37 = vsub.f32 16.0, %v1499_v55  ;;  %v1208_v31 = vmul.f32 %v2035_v38, %v1186_v48 }
 0x179   :  { %v1733_v45 = vpop.eup %1732  ;;  %v1324_v59 = vsel %vm2624_vm15, %v1236_v3, 0.0  ;;  %v1237_v28 = vmul.f32 %v1221_v4, %v1221_v4  ;;  %v1222_v21 = vsub.f32 %v539_v12, %v1206_v10  ;;  %v524_v57 = vsub.f32 16.0, %v1496_v1 }
 0x17a   :  { %v1120_v11 = vmul.f32 %v1733_v45, %v2552_v35  ;;  %vm1142_vm4 = vcmp.eq.f32.partialorder %v2587_v22, inf  ;;  %v541_v23 = vmul.f32 0.0625, %v525_v37  ;;  %v1145_v41 = vand.u32 2147483648, %v2587_v22  ;;  %1372 = vst [vmem:[#allocation12 + $0x38] sm:$0xff] %v1324_v59 }
 0x17b   :  { %v1735_v25 = vpop.eup %1734  ;;  %v1325_v9 = vsel %vm2644_vm3, %v1237_v28, 0.0  ;;  %v1238_v8 = vmul.f32 %v1222_v21, %v1222_v21  ;;  %v1505_v40 = vadd.f32 %v1504_v27, %v1503_v46  ;;  %v540_v19 = vmul.f32 0.0625, %v524_v57 }
 0x17c   :  { %v1737_v24 = vpop.eup %1736  ;;  %v1122_v2 = vsel %vm1121_vm1, %v2552_v35, %v1120_v11  ;;  %v1184_v33 = vmul.f32 0.6931472, %v1735_v25  ;;  %v1224_v13 = vsub.f32 %v541_v23, %v1208_v31  ;;  %1373 = vst [vmem:[#allocation12 + $0x40] sm:$0xff] %v1325_v9  ;;  %vm1144_vm7 = vcmp.eq.f32.partialorder %v2587_v22, 0.0 }
 0x17d   :  { %v1125_v47 = vsel %vm1123_vm2, %v1124_v15, %v1122_v2  ;;  %v1141_v5 = vmul.f32 %v1737_v24, %v2587_v22  ;;  %v1326_v63 = vsel %vm2658_vm5, %v1238_v8, 0.0  ;;  %v527_v29 = vsub.f32 16.0, %v1505_v40 }
 0x17e   :  { %v1159_v51 = vadd.f32 %v1125_v47, %v2519_v52  ;;  %v1207_v35 = vmul.f32 %v2035_v38, %v1184_v33  ;;  %v1240_v36 = vmul.f32 %v1224_v13, %v1224_v13  ;;  %1374 = vst [vmem:[#allocation12 + $0x48] sm:$0xff] %v1326_v63  ;;  %v1507_v52 = vpop.f32.mrf.mxu0  ;;  %vm1135_vm9 = vcmp.eq.f32.partialorder %v2606_v42, inf }
 0x17f   :  { %v1143_v20 = vsel %vm1142_vm4, %v2587_v22, %v1141_v5  ;;  %vm1297_vm10 = vcmp.ge.s32.totalorder %v2037_v39, %v2634_v14  ;;  %v543_v18 = vmul.f32 0.0625, %v527_v29  ;;  %vm1137_vm11 = vcmp.eq.f32.partialorder %v2606_v42, 0.0 }
 0x180   :  { %v1739_v16 = vpop.eup %1738  ;;  %1742 = vlog2.f32 %v1159_v51  ;;  %v1146_v34 = vsel %vm1144_vm7, %v1145_v41, %v1143_v20  ;;  %v1223_v56 = vsub.f32 %v540_v19, %v1207_v35  ;;  %v1328_v50 = vsel %vm2678_vm6, %v1240_v36, 0.0  ;;  %v1509_v6 = vpop.f32.mrf.mxu0  ;;  %vm1314_vm12 = vmand %vm1297_vm10, %vm1300_vm14 }
 0x181   :  { %v1741_v44 = vpop.eup %1740  ;;  %v1162_v61 = vadd.f32 %v1146_v34, %v2527_v17  ;;  %v1190_v1 = vmul.f32 0.6931472, %v1739_v16  ;;  %v1138_v17 = vand.u32 2147483648, %v2606_v42  ;;  %1376 = vst [vmem:[#allocation12 + $0x58] sm:$0xff] %v1328_v50  ;;  %v1502_v3 = vadd.f32 %v2601_v60, %v2583_v0 }
 0x182   :  { %v1134_v46 = vmul.f32 %v1741_v44, %v2606_v42  ;;  %v1239_v54 = vmul.f32 %v1223_v56, %v1223_v56  ;;  %v1510_v4 = vpop.f32.mrf.mxu0  ;;  %v1258_v26 = vadd.s32 96, %v2021_v32  ;;  %v1508_v21 = vadd.f32 %v1507_v52, %v1506_v49 }
 0x183   :  { %1744 = vlog2.f32 %v1162_v61  ;;  %v1210_v62 = vmul.f32 %v2035_v38, %v1190_v1  ;;  %v526_v15 = vsub.f32 16.0, %v1502_v3  ;;  %v1260_v41 = vadd.s32 112, %v2021_v32 }
 0x184   :  { %v1136_v43 = vsel %vm1135_vm9, %v2606_v42, %v1134_v46  ;;  %v1327_v30 = vsel %vm2696_vm8, %v1239_v54, 0.0  ;;  %v1511_v42 = vadd.f32 %v1510_v4, %v1509_v6  ;;  %vm1296_vm13 = vcmp.ge.s32.totalorder %v2037_v39, %v1258_v26 }
 0x185   :  { %v1139_v10 = vsel %vm1137_vm11, %v1138_v17, %v1136_v43  ;;  %v1226_v55 = vsub.f32 %v543_v18, %v1210_v62  ;;  %1375 = vst [vmem:[#allocation12 + $0x50] sm:$0xff] %v1327_v30  ;;  %v542_v59 = vmul.f32 0.0625, %v526_v15  ;;  %vm2721_vm15 = vmand %vm1296_vm13, %vm1300_vm14  ;;  %v528_v25 = vsub.f32 16.0, %v1508_v21 }
 0x186   :  { %v1161_v48 = vadd.f32 %v1139_v10, %v2565_v7  ;;  %v529_v27 = vsub.f32 16.0, %v1511_v42  ;;  %v1261_v7 = vadd.s32 120, %v2021_v32  ;;  %vm1298_vm2 = vcmp.ge.s32.totalorder %v2037_v39, %v1260_v41 }
 0x187   :  { %v1242_v14 = vmul.f32 %v1226_v55, %v1226_v55  ;;  %v544_v33 = vmul.f32 0.0625, %v528_v25  ;;  %vm1315_vm3 = vmand %vm1298_vm2, %vm1300_vm14 }
 0x188   :  { %1746 = vlog2.f32 %v1161_v48  ;;  %v545_v11 = vmul.f32 0.0625, %v529_v27  ;;  %vm1299_vm0 = vcmp.ge.s32.totalorder %v2037_v39, %v1261_v7 }
 0x189   :  { %v1330_v12 = vsel %vm1314_vm12, %v1242_v14, 0.0  ;;  %vm1316_vm1 = vmand %vm1299_vm0, %vm1300_vm14 }
 0x18a   :  { %1378 = vst [vmem:[#allocation12 + $0x68] sm:$0xff] %v1330_v12 }
 0x18d   :  { %v1743_v37 = vpop.eup %1742 }
 0x18e   :  { %v1188_v31 = vmul.f32 0.6931472, %v1743_v37 }
 0x190   :  { %v1745_v45 = vpop.eup %1744  ;;  %v1209_v28 = vmul.f32 %v2035_v38, %v1188_v31 }
 0x191   :  { %v1194_v0 = vmul.f32 0.6931472, %v1745_v45 }
 0x192   :  { %v1225_v60 = vsub.f32 %v542_v59, %v1209_v28 }
 0x193   :  { %v1212_v58 = vmul.f32 %v2035_v38, %v1194_v0 }
 0x194   :  { %v1241_v23 = vmul.f32 %v1225_v60, %v1225_v60 }
 0x195   :  { %v1747_v9 = vpop.eup %1746  ;;  %v1228_v8 = vsub.f32 %v545_v11, %v1212_v58 }
 0x196   :  { %v1329_v40 = vsel %vm2721_vm15, %v1241_v23, 0.0  ;;  %v1192_v24 = vmul.f32 0.6931472, %v1747_v9 }
 0x197   :  { %v1244_v2 = vmul.f32 %v1228_v8, %v1228_v8  ;;  %1377 = vst [vmem:[#allocation12 + $0x60] sm:$0xff] %v1329_v40 }
 0x198   :  { %v1211_v13 = vmul.f32 %v2035_v38, %v1192_v24 }
 0x199   :  { %v1332_v49 = vsel %vm1316_vm1, %v1244_v2, 0.0 }
 0x19a   :  { %v1227_v47 = vsub.f32 %v544_v33, %v1211_v13  ;;  %1380 = vst [vmem:[#allocation12 + $0x78] sm:$0xff] %v1332_v49 }
 0x19c   :  { %v1243_v32 = vmul.f32 %v1227_v47, %v1227_v47 }
 0x19e   :  { %v1331_v5 = vsel %vm1315_vm3, %v1243_v32, 0.0 }
 0x19f   :  { %1379 = vst [vmem:[#allocation12 + $0x70] sm:$0xff] %v1331_v5 }
 0x1a0   :  { %1839 = shalt.err (!%p1836_p10)
}
 0x1a1   :  { %1392 = dma.vmem_to_hbm [thread:$0]  %s1387_s15, 2048, %s2747_s5, [#allocation6], %s1860_s28, %s1860_s28, %s1861_s29  }
 0x1a2   :  { %1854 = dma.done.wait [#allocation6], 2048  }
 0x1a3   :  { %1855 = vsyncadd [#allocation6], 4294965248 }
 0x1a4   :  { %1396 = vsyncpa [#allocation5], 1 }
 0x1a5   :  { %1397 = vsyncpa [#allocation8], 1 }
 0x1a6   :  { %1398 = vsyncpa [#allocation11], 1 }
 0x1a7   :  { %1399 = vsyncpa [#allocation6], 1 }

</bundles_post_ra>
